<compile_context>
chip_gen: v5e
topology: v5e:2x2
jax: 0.10.0
libtpu: 0.0.40
codegen_flags: <defaults>
</compile_context>

<pallas_src>
import numpy as np
import jax
import jax.numpy as jnp
from jax.experimental import pallas as pl
from jax.experimental.pallas import tpu as pltpu

# ----------------------------- hyper-parameters ------------------------------
TEXT_DIM = 32
NUM_CODEBOOKS = 4
CODEBOOK_SIZE = 64
HIDDEN_DIM = 32
STYLE_DIM = 16
GROUPS = 4
DILATIONS = (1, 3, 9, 27)
LN_EPS = 1e-5
FEAT_LANES = 128                      # packed [ff | bw | final | conf | pad]

# Tap shifts of the (pointwise-folded) dilated pyramid.  Entry 0 is the merged
# centre tap (shift 0 for every dilation); the rest are the -d/+d side taps.
PYR_SHIFTS = (0,) + tuple(s for d in DILATIONS for s in (-d, d))

# TODO(synk): OptimizedSSMBlock's definition is not provided in the reference
# source; it is approximated as a causal diagonal exponential-decay linear SSM
# on the channel-mean signal (decay a, input scale b, output scale c, skip d)
# followed by SiLU.
SSM_PARAMS = ((0.90, 0.5, 1.0, 0.25),
              (0.80, 0.5, 1.0, 0.25),
              (0.70, 0.5, 1.0, 0.25))


# --------------------------------- kernel ------------------------------------
def prosody_kernel(
    x_tok_ref, cond_in_ref, posconf_ref, decay_ref,
    cond_w_ref, cond_b_ref, pyr_w_ref, small_b_ref,
    fus_w1_ref, fus_w2_ref, head_w1_ref, head_b1_ref, head_w2_ref, head_b2_ref,
    logits_ref, feats_ref,
):
    f32, bf16 = jnp.float32, jnp.bfloat16
    BB, T, H = x_tok_ref.shape
    rows = BB * T
    NH = NUM_CODEBOOKS * H
    HC = H // 2
    PAD = max(DILATIONS)

    # ---- conditioning: fused [text_proj | FiLM(gamma,beta)] matmul ----------
    cin = cond_in_ref[...].reshape(BB, TEXT_DIM + STYLE_DIM)
    cond = jnp.dot(cin.astype(bf16), cond_w_ref[...],
                   preferred_element_type=f32) + cond_b_ref[...]          # (BB, 3H)
    text_cond = cond[:, None, :H]                                         # (BB,1,H)
    gamma = cond[:, None, H:2 * H]
    beta = cond[:, None, 2 * H:]

    x3 = x_tok_ref[...] + posconf_ref[...][None, :, :] + text_cond        # (BB,T,H)
    x3 = gamma * x3 + beta
    x2 = x3.reshape(rows, H)

    # ---- forward path: 3 placeholder SSM blocks on the channel mean --------
    # decay matrices are precomputed host-side (bf16, resident); since y is
    # broadcast over H, mean(ff_k) = mean(x) + sum_j<=k y_j, so a single mean
    # suffices and the per-block updates act on a (T, BB) column matrix.
    u_rows = jnp.mean(x2, axis=-1, keepdims=True)                         # (rows,1)
    ucur = jnp.concatenate([u_rows[b * T:(b + 1) * T, :] for b in range(BB)],
                           axis=1)                                        # (T, BB)
    ysum = jnp.zeros_like(ucur)
    for i, (_a, _b, c_out, skip) in enumerate(SSM_PARAMS):
        h = jnp.dot(decay_ref[i], ucur.astype(bf16),
                    preferred_element_type=f32)                           # (T, BB)
        y = jax.nn.silu(c_out * h + skip * ucur)
        ysum = ysum + y
        ucur = ucur + y
    ysum_rows = jnp.concatenate([ysum[:, b:b + 1] for b in range(BB)], axis=0)
    ff2 = x2 + ysum_rows                                                  # (rows, H)

    # ---- backward path: dilated grouped pyramid (+ folded pointwise conv)
    #      as ONE (rows, 9H) @ (9H, H) matmul -------------------------------
    zpad = jnp.zeros((BB, PAD, H), f32)
    xpad = jnp.concatenate([zpad, x3, zpad], axis=1)                      # (BB, T+2P, H)
    xcat = jnp.concatenate(
        [xpad[:, PAD + s: PAD + s + T, :].reshape(rows, H) for s in PYR_SHIFTS],
        axis=-1).astype(bf16)                                             # (rows, 9H)
    bw = jnp.dot(xcat, pyr_w_ref[...], preferred_element_type=f32)        # (rows, H)
    bw = bw + small_b_ref[0:1, :] + x2                                    # bias + residual
    mu = jnp.mean(bw, axis=-1, keepdims=True)
    var = jnp.mean((bw - mu) ** 2, axis=-1, keepdims=True)
    bw = ((bw - mu) * jax.lax.rsqrt(var + LN_EPS) * small_b_ref[1:2, :]
          + small_b_ref[2:3, :])

    # ---- fusion MLP (Dropout = eval identity) ------------------------------
    fcat = jnp.concatenate([ff2, bw], axis=-1).astype(bf16)               # (rows, 2H)
    h1 = jax.nn.silu(jnp.dot(fcat, fus_w1_ref[...],
                             preferred_element_type=f32) + small_b_ref[3:4, :])
    final = (jnp.dot(h1.astype(bf16), fus_w2_ref[...],
                     preferred_element_type=f32) + small_b_ref[4:5, :])   # (rows, H)

    # ---- fused output heads + confidence -----------------------------------
    hcat = jax.nn.silu(jnp.dot(final.astype(bf16), head_w1_ref[...],
                               preferred_element_type=f32) + head_b1_ref[...])
    logits = (jnp.dot(hcat[:, :NH].astype(bf16), head_w2_ref[...],
                      preferred_element_type=f32) + head_b2_ref[...])     # (rows, 4K)
    logits_ref[...] = logits.reshape(BB, T, NUM_CODEBOOKS * CODEBOOK_SIZE)

    conf = jax.nn.sigmoid(
        jnp.sum(hcat[:, NH:NH + HC] * small_b_ref[5:6, :HC], axis=-1, keepdims=True)
        + small_b_ref[6:7, 0:1])                                          # (rows, 1)

    pad_w = FEAT_LANES - (3 * H + 1)
    fpack = jnp.concatenate([ff2, bw, final, conf,
                             jnp.zeros((rows, pad_w), f32)], axis=-1)     # lane-dense
    feats_ref[...] = fpack.reshape(BB, T, FEAT_LANES)


# ----------------------------- parameter setup --------------------------------
def _expand_grouped(w):
    """PyTorch grouped Conv1d weight (out_ch, in_ch//groups, k) ->
    per-tap dense block-diagonal weights (k, in_ch, out_ch)."""
    w = np.asarray(w, np.float32)
    out_ch, in_pg, kk = w.shape
    in_ch = in_pg * GROUPS
    out_pg = out_ch // GROUPS
    dense = np.zeros((kk, in_ch, out_ch), np.float32)
    for o in range(out_ch):
        g = o // out_pg
        dense[:, g * in_pg:(g + 1) * in_pg, o] = w[o].T
    return dense


def init_params(key):
    ks = list(jax.random.split(key, 40))
    it = iter(ks)

    def nrm(shape, scale=0.02):
        return (scale * jax.random.normal(next(it), shape)).astype(jnp.float32)

    H, K, NCB = HIDDEN_DIM, CODEBOOK_SIZE, NUM_CODEBOOKS
    p = {}
    p['tok_emb'] = nrm((NCB, K, H))
    p['pos_emb'] = nrm((1000, H))
    p['conf_emb'] = nrm((20, H))
    p['text_w'] = nrm((TEXT_DIM, H))
    p['text_b'] = nrm((1, H))
    p['film_w'] = nrm((STYLE_DIM, 2 * H))
    p['film_b'] = nrm((1, 2 * H))
    p['pyr_w_raw'] = [nrm((H // 4, H // GROUPS, 3), 0.1) for _ in range(4)]
    p['pyr_b'] = nrm((4, 1, H // 4))
    p['pw_w'] = nrm((H, H))        # (in, out)
    p['pw_b'] = nrm((1, H))
    p['ln_g'] = jnp.ones((1, H), jnp.float32)
    p['ln_b'] = jnp.zeros((1, H), jnp.float32)
    p['fus_w1'] = nrm((2 * H, H))
    p['fus_b1'] = nrm((1, H))
    p['fus_w2'] = nrm((H, H))
    p['fus_b2'] = nrm((1, H))
    p['head_w1'] = nrm((NCB, H, H))
    p['head_b1'] = nrm((NCB, 1, H))
    p['head_w2'] = nrm((NCB, H, K))
    p['head_b2'] = nrm((NCB, 1, K))
    p['conf_w1'] = nrm((H, H // 2))
    p['conf_b1'] = nrm((1, H // 2))
    p['conf_w2'] = nrm((H // 2, 1))
    p['conf_b2'] = nrm((1, 1))
    return p


def prepare_kernel_params(p):
    """Host-side folding / fusion of weights into MXU-friendly shapes."""
    H, K, NCB = HIDDEN_DIM, CODEBOOK_SIZE, NUM_CODEBOOKS
    HC = H // 2
    bf16, f32 = jnp.bfloat16, np.float32

    # --- fold the 1x1 pointwise conv into every dilated-pyramid tap, then
    #     pack all 9 taps along K (order = PYR_SHIFTS) ---
    pw_w = np.asarray(p['pw_w'], f32)                      # (H, H)  (in, out)
    pw_b = np.asarray(p['pw_b'], f32)                      # (1, H)
    pyr_b = np.asarray(p['pyr_b'], f32)                    # (4, 1, H//4)
    in_pg = H // 4
    folded, bias_fold = [], pw_b.copy()
    for i in range(4):
        dense = _expand_grouped(p['pyr_w_raw'][i])         # (3, H, H//4)
        blk = pw_w[i * in_pg:(i + 1) * in_pg, :]           # (H//4, H)
        folded.append(np.einsum('khc,co->kho', dense, blk))
        bias_fold = bias_fold + pyr_b[i] @ blk
    taps = [sum(f[1] for f in folded)]                     # merged centre tap
    for i in range(4):
        taps.append(folded[i][0])                          # shift -d
        taps.append(folded[i][2])                          # shift +d
    pyr_w_packed = np.concatenate(taps, axis=0)            # (9H, H)

    # --- fused conditioning weight: [text_cond | gamma | beta] ---
    cond_w = np.zeros((TEXT_DIM + STYLE_DIM, 3 * H), f32)
    cond_w[:TEXT_DIM, :H] = np.asarray(p['text_w'], f32)
    cond_w[TEXT_DIM:, H:] = np.asarray(p['film_w'], f32)
    cond_b = np.concatenate([np.asarray(p['text_b'], f32),
                             np.asarray(p['film_b'], f32)], axis=1)       # (1, 3H)

    # --- fuse the 4 codebook heads (+ confidence hidden layer) ---
    head_w1 = np.asarray(p['head_w1'], f32)
    head_b1 = np.asarray(p['head_b1'], f32)
    head_w2 = np.asarray(p['head_w2'], f32)
    head_b2 = np.asarray(p['head_b2'], f32)
    hw1 = np.concatenate([head_w1[c] for c in range(NCB)]
                         + [np.asarray(p['conf_w1'], f32)], axis=1)       # (H, 4H+H/2)
    hb1 = np.concatenate([head_b1[c] for c in range(NCB)]
                         + [np.asarray(p['conf_b1'], f32)], axis=1)       # (1, 4H+H/2)
    hw2 = np.zeros((NCB * H, NCB * K), f32)                               # block-diag
    for c in range(NCB):
        hw2[c * H:(c + 1) * H, c * K:(c + 1) * K] = head_w2[c]
    hb2 = np.concatenate([head_b2[c] for c in range(NCB)], axis=1)        # (1, 4K)

    # --- small bias pack (8, H): pyr_b, ln_g, ln_b, fus_b1, fus_b2,
    #     conf_w2 row, conf_b2 ---
    small = np.zeros((8, H), f32)
    small[0] = bias_fold[0]
    small[1] = np.asarray(p['ln_g'], f32)[0]
    small[2] = np.asarray(p['ln_b'], f32)[0]
    small[3] = np.asarray(p['fus_b1'], f32)[0]
    small[4] = np.asarray(p['fus_b2'], f32)[0]
    small[5, :HC] = np.asarray(p['conf_w2'], f32)[:, 0]
    small[6, 0] = np.asarray(p['conf_b2'], f32)[0, 0]

    return dict(
        cond_w=jnp.asarray(cond_w, bf16), cond_b=jnp.asarray(cond_b, jnp.float32),
        pyr_w=jnp.asarray(pyr_w_packed, bf16),
        small_b=jnp.asarray(small, jnp.float32),
        fus_w1=jnp.asarray(np.asarray(p['fus_w1'], f32), bf16),
        fus_w2=jnp.asarray(np.asarray(p['fus_w2'], f32), bf16),
        head_w1=jnp.asarray(hw1, bf16), head_b1=jnp.asarray(hb1, jnp.float32),
        head_w2=jnp.asarray(hw2, bf16), head_b2=jnp.asarray(hb2, jnp.float32),
    )


def make_decay_mats(T):
    """Precompute the placeholder-SSM causal decay matrices (3, T, T) bf16."""
    t = np.arange(T, dtype=np.float64)
    diff = t[:, None] - t[None, :]
    mats = []
    for (a, b_in, _c, _s) in SSM_PARAMS:
        m = np.where(diff >= 0.0, b_in * np.power(a, np.maximum(diff, 0.0)), 0.0)
        mats.append(m)
    return jnp.asarray(np.stack(mats).astype(np.float32), jnp.bfloat16)


# --------------------------------- wrapper ------------------------------------
def prosody_forward(params, kparams, text_emb, current_tokens, style_embedding,
                    confidence_level=5):
    # TODO(synk): the style_embedding=None branch (FiLM skipped) is not
    # implemented; a style embedding is required.
    B, NCB, T = current_tokens.shape
    H, K = HIDDEN_DIM, CODEBOOK_SIZE
    NK = NCB * K

    # glue: embedding gathers + static prep (plain JAX / host)
    toks = [params['tok_emb'][cb][current_tokens[:, cb, :]] for cb in range(NCB)]
    x_tok = jnp.stack(toks, axis=2).mean(axis=2).astype(jnp.float32)      # (B, T, H)
    conf_idx = min(int(confidence_level), 19)
    posconf = (params['pos_emb'][:T]
               + params['conf_emb'][conf_idx][None, :]).astype(jnp.float32)   # (T, H)
    cond_in = jnp.concatenate([text_emb.astype(jnp.float32),
                               style_embedding.astype(jnp.float32)],
                              axis=-1)[:, None, :]                        # (B, 1, 48)
    decay = make_decay_mats(T)                                            # (3, T, T)

    # 2 batch-blocks when B is even (both v7x cores; only 2 serial steps on
    # single-TC v5e/v6e), otherwise one block over the whole batch.
    num_blocks = 2 if (B % 2 == 0 and B >= 2) else 1
    BB = B // num_blocks

    kp = kparams
    inputs = (x_tok, cond_in, posconf, decay,
              kp['cond_w'], kp['cond_b'], kp['pyr_w'], kp['small_b'],
              kp['fus_w1'], kp['fus_w2'],
              kp['head_w1'], kp['head_b1'], kp['head_w2'], kp['head_b2'])

    def shared(arr):
        return pl.BlockSpec(arr.shape, lambda b, _n=arr.ndim: (0,) * _n)

    in_specs = [
        pl.BlockSpec((BB, T, H), lambda b: (b, 0, 0)),
        pl.BlockSpec((BB, 1, TEXT_DIM + STYLE_DIM), lambda b: (b, 0, 0)),
    ] + [shared(a) for a in inputs[2:]]

    out_shape = (
        jax.ShapeDtypeStruct((B, T, NK), jnp.float32),          # lane-dense logits
        jax.ShapeDtypeStruct((B, T, FEAT_LANES), jnp.float32),  # [ff|bw|final|conf|pad]
    )
    out_specs = (
        pl.BlockSpec((BB, T, NK), lambda b: (b, 0, 0)),
        pl.BlockSpec((BB, T, FEAT_LANES), lambda b: (b, 0, 0)),
    )

    logits_flat, feats = pl.pallas_call(
        prosody_kernel,
        grid=(num_blocks,),
        out_shape=out_shape,
        in_specs=in_specs,
        out_specs=out_specs,
        compiler_params=pltpu.CompilerParams(
            dimension_semantics=("parallel",)),
    )(*inputs)

    logits = jnp.transpose(logits_flat.reshape(B, T, NCB, K), (0, 2, 1, 3))
    return {
        'logits': logits,                               # (B, NCB, T, K)
        'confidence': feats[..., 3 * H],                # (B, T)
        'forward_features': feats[..., :H],
        'backward_features': feats[..., H:2 * H],
        'final_features': feats[..., 2 * H:3 * H],
    }


# ----------------------------------- main --------------------------------------
if __name__ == "__main__":
    key = jax.random.PRNGKey(0)
    pkey, k1, k2, k3 = jax.random.split(key, 4)
    params = init_params(pkey)
    kparams = prepare_kernel_params(params)

    B, T = 2, 16
    text_emb = jax.random.normal(k1, (B, TEXT_DIM), jnp.float32)
    current_tokens = jax.random.randint(k2, (B, NUM_CODEBOOKS, T), 0, CODEBOOK_SIZE)
    style_embedding = jax.random.normal(k3, (B, STYLE_DIM), jnp.float32)

    out = prosody_forward(params, kparams, text_emb, current_tokens,
                          style_embedding, confidence_level=5)
    jax.block_until_ready(out)

    assert out['logits'].shape == (B, NUM_CODEBOOKS, T, CODEBOOK_SIZE)
    assert out['confidence'].shape == (B, T)
    assert out['forward_features'].shape == (B, T, HIDDEN_DIM)
    assert out['backward_features'].shape == (B, T, HIDDEN_DIM)
    assert out['final_features'].shape == (B, T, HIDDEN_DIM)
    print("KERNEL_OK")
</pallas_src>

<mosaic_0001>
module attributes {stable_mosaic.version = 11 : i64} {
  func.func @prosody_kernel(%arg0: i32, %arg1: memref<1x16x32xf32, #tpu.memory_space<vmem>>, %arg2: memref<1x1x48xf32, #tpu.memory_space<vmem>>, %arg3: memref<16x32xf32, #tpu.memory_space<vmem>>, %arg4: memref<3x16x16xbf16, #tpu.memory_space<vmem>>, %arg5: memref<48x96xbf16, #tpu.memory_space<vmem>>, %arg6: memref<1x96xf32, #tpu.memory_space<vmem>>, %arg7: memref<288x32xbf16, #tpu.memory_space<vmem>>, %arg8: memref<8x32xf32, #tpu.memory_space<vmem>>, %arg9: memref<64x32xbf16, #tpu.memory_space<vmem>>, %arg10: memref<32x32xbf16, #tpu.memory_space<vmem>>, %arg11: memref<32x144xbf16, #tpu.memory_space<vmem>>, %arg12: memref<1x144xf32, #tpu.memory_space<vmem>>, %arg13: memref<128x256xbf16, #tpu.memory_space<vmem>>, %arg14: memref<1x256xf32, #tpu.memory_space<vmem>>, %arg15: memref<1x16x256xf32, #tpu.memory_space<vmem>>, %arg16: memref<1x16x128xf32, #tpu.memory_space<vmem>>) attributes {dimension_semantics = [#tpu.dimension_semantics<parallel>], iteration_bounds = array<i64: 2>, scalar_prefetch = 0 : i64, scratch_operands = 0 : i64, tpu.core_type = #tpu.core_type<tc>, window_params = [{transform_indices = @transform_0, window_bounds = array<i64: 1, 16, 32>}, {transform_indices = @transform_1, window_bounds = array<i64: 1, 1, 48>}, {pipeline_mode = #tpu.pipeline_mode<synchronous>, transform_indices = @transform_2, window_bounds = array<i64: 16, 32>}, {pipeline_mode = #tpu.pipeline_mode<synchronous>, transform_indices = @transform_3, window_bounds = array<i64: 3, 16, 16>}, {pipeline_mode = #tpu.pipeline_mode<synchronous>, transform_indices = @transform_4, window_bounds = array<i64: 48, 96>}, {pipeline_mode = #tpu.pipeline_mode<synchronous>, transform_indices = @transform_5, window_bounds = array<i64: 1, 96>}, {pipeline_mode = #tpu.pipeline_mode<synchronous>, transform_indices = @transform_6, window_bounds = array<i64: 288, 32>}, {pipeline_mode = #tpu.pipeline_mode<synchronous>, transform_indices = @transform_7, window_bounds = array<i64: 8, 32>}, {pipeline_mode = #tpu.pipeline_mode<synchronous>, transform_indices = @transform_8, window_bounds = array<i64: 64, 32>}, {pipeline_mode = #tpu.pipeline_mode<synchronous>, transform_indices = @transform_9, window_bounds = array<i64: 32, 32>}, {pipeline_mode = #tpu.pipeline_mode<synchronous>, transform_indices = @transform_10, window_bounds = array<i64: 32, 144>}, {pipeline_mode = #tpu.pipeline_mode<synchronous>, transform_indices = @transform_11, window_bounds = array<i64: 1, 144>}, {pipeline_mode = #tpu.pipeline_mode<synchronous>, transform_indices = @transform_12, window_bounds = array<i64: 128, 256>}, {pipeline_mode = #tpu.pipeline_mode<synchronous>, transform_indices = @transform_13, window_bounds = array<i64: 1, 256>}, {transform_indices = @transform_14, window_bounds = array<i64: 1, 16, 256>}, {transform_indices = @transform_15, window_bounds = array<i64: 1, 16, 128>}]} {
    %c0 = arith.constant 0 : index
    %c0_0 = arith.constant 0 : index
    %c0_1 = arith.constant 0 : index
    %0 = vector.load %arg2[%c0, %c0_0, %c0_1] : memref<1x1x48xf32, #tpu.memory_space<vmem>>, vector<1x1x48xf32>
    %1 = vector.shape_cast %0 : vector<1x1x48xf32> to vector<1x48xf32>
    %2 = arith.truncf %1 : vector<1x48xf32> to vector<1x48xbf16>
    %c0_2 = arith.constant 0 : index
    %c0_3 = arith.constant 0 : index
    %3 = vector.load %arg5[%c0_2, %c0_3] : memref<48x96xbf16, #tpu.memory_space<vmem>>, vector<48x96xbf16>
    %cst = arith.constant dense<0.000000e+00> : vector<1x96xf32>
    %4 = tpu.matmul %2, %3, %cst {dimension_numbers = #tpu.dot_dimension_numbers<[1], [0], [0], [1], [0, 0, 1, 1], [], []>} : vector<1x48xbf16>, vector<48x96xbf16>, vector<1x96xf32> -> vector<1x96xf32>
    %c0_4 = arith.constant 0 : index
    %c0_5 = arith.constant 0 : index
    %5 = vector.load %arg6[%c0_4, %c0_5] : memref<1x96xf32, #tpu.memory_space<vmem>>, vector<1x96xf32>
    %6 = arith.addf %4, %5 : vector<1x96xf32>
    %7 = vector.extract_strided_slice %6 {offsets = [0, 0], sizes = [1, 32], strides = [1, 1]} : vector<1x96xf32> to vector<1x32xf32>
    %8 = vector.shape_cast %7 : vector<1x32xf32> to vector<1x1x32xf32>
    %9 = vector.extract_strided_slice %6 {offsets = [0, 32], sizes = [1, 32], strides = [1, 1]} : vector<1x96xf32> to vector<1x32xf32>
    %10 = vector.shape_cast %9 : vector<1x32xf32> to vector<1x1x32xf32>
    %11 = vector.extract_strided_slice %6 {offsets = [0, 64], sizes = [1, 32], strides = [1, 1]} : vector<1x96xf32> to vector<1x32xf32>
    %12 = vector.shape_cast %11 : vector<1x32xf32> to vector<1x1x32xf32>
    %c0_6 = arith.constant 0 : index
    %c0_7 = arith.constant 0 : index
    %c0_8 = arith.constant 0 : index
    %13 = vector.load %arg1[%c0_6, %c0_7, %c0_8] : memref<1x16x32xf32, #tpu.memory_space<vmem>>, vector<1x16x32xf32>
    %c0_9 = arith.constant 0 : index
    %c0_10 = arith.constant 0 : index
    %14 = vector.load %arg3[%c0_9, %c0_10] : memref<16x32xf32, #tpu.memory_space<vmem>>, vector<16x32xf32>
    %15 = vector.shape_cast %14 : vector<16x32xf32> to vector<1x16x32xf32>
    %16 = arith.addf %13, %15 : vector<1x16x32xf32>
    %17 = vector.broadcast %8 : vector<1x1x32xf32> to vector<1x16x32xf32>
    %18 = arith.addf %16, %17 : vector<1x16x32xf32>
    %19 = vector.broadcast %10 : vector<1x1x32xf32> to vector<1x16x32xf32>
    %20 = arith.mulf %19, %18 : vector<1x16x32xf32>
    %21 = vector.broadcast %12 : vector<1x1x32xf32> to vector<1x16x32xf32>
    %22 = arith.addf %20, %21 : vector<1x16x32xf32>
    %23 = vector.shape_cast %22 : vector<1x16x32xf32> to vector<16x32xf32>
    %cst_11 = arith.constant dense<0.000000e+00> : vector<16xf32>
    %24 = vector.multi_reduction <add>, %23, %cst_11 [1] : vector<16x32xf32> to vector<16xf32>
    %25 = vector.shape_cast %24 : vector<16xf32> to vector<16x1xf32>
    %cst_12 = arith.constant 3.200000e+01 : f32
    %26 = vector.broadcast %cst_12 : f32 to vector<16x1xf32>
    %27 = arith.divf %25, %26 : vector<16x1xf32>
    %cst_13 = arith.constant 0.000000e+00 : f32
    %28 = vector.broadcast %cst_13 : f32 to vector<16x1xf32>
    %c0_14 = arith.constant 0 : index
    %c0_15 = arith.constant 0 : index
    %c0_16 = arith.constant 0 : index
    %29 = vector.load %arg4[%c0_14, %c0_15, %c0_16] : memref<3x16x16xbf16, #tpu.memory_space<vmem>>, vector<1x16x16xbf16>
    %30 = vector.shape_cast %29 : vector<1x16x16xbf16> to vector<16x16xbf16>
    %31 = arith.truncf %27 : vector<16x1xf32> to vector<16x1xbf16>
    %cst_17 = arith.constant dense<0.000000e+00> : vector<16x1xf32>
    %32 = tpu.matmul %30, %31, %cst_17 {dimension_numbers = #tpu.dot_dimension_numbers<[1], [0], [0], [1], [0, 0, 1, 1], [], []>} : vector<16x16xbf16>, vector<16x1xbf16>, vector<16x1xf32> -> vector<16x1xf32>
    %cst_18 = arith.constant 1.000000e+00 : f32
    %33 = vector.broadcast %cst_18 : f32 to vector<16x1xf32>
    %34 = arith.mulf %33, %32 : vector<16x1xf32>
    %cst_19 = arith.constant 2.500000e-01 : f32
    %35 = vector.broadcast %cst_19 : f32 to vector<16x1xf32>
    %36 = arith.mulf %35, %27 : vector<16x1xf32>
    %37 = arith.addf %34, %36 : vector<16x1xf32>
    %38 = arith.negf %37 : vector<16x1xf32>
    %39 = math.exp %38 : vector<16x1xf32>
    %cst_20 = arith.constant 1.000000e+00 : f32
    %40 = vector.broadcast %cst_20 : f32 to vector<16x1xf32>
    %41 = arith.addf %40, %39 : vector<16x1xf32>
    %42 = arith.divf %40, %41 : vector<16x1xf32>
    %43 = arith.mulf %37, %42 : vector<16x1xf32>
    %44 = arith.addf %28, %43 : vector<16x1xf32>
    %45 = arith.addf %27, %43 : vector<16x1xf32>
    %c1 = arith.constant 1 : index
    %c0_21 = arith.constant 0 : index
    %c0_22 = arith.constant 0 : index
    %46 = vector.load %arg4[%c1, %c0_21, %c0_22] : memref<3x16x16xbf16, #tpu.memory_space<vmem>>, vector<1x16x16xbf16>
    %47 = vector.shape_cast %46 : vector<1x16x16xbf16> to vector<16x16xbf16>
    %48 = arith.truncf %45 : vector<16x1xf32> to vector<16x1xbf16>
    %cst_23 = arith.constant dense<0.000000e+00> : vector<16x1xf32>
    %49 = tpu.matmul %47, %48, %cst_23 {dimension_numbers = #tpu.dot_dimension_numbers<[1], [0], [0], [1], [0, 0, 1, 1], [], []>} : vector<16x16xbf16>, vector<16x1xbf16>, vector<16x1xf32> -> vector<16x1xf32>
    %cst_24 = arith.constant 1.000000e+00 : f32
    %50 = vector.broadcast %cst_24 : f32 to vector<16x1xf32>
    %51 = arith.mulf %50, %49 : vector<16x1xf32>
    %cst_25 = arith.constant 2.500000e-01 : f32
    %52 = vector.broadcast %cst_25 : f32 to vector<16x1xf32>
    %53 = arith.mulf %52, %45 : vector<16x1xf32>
    %54 = arith.addf %51, %53 : vector<16x1xf32>
    %55 = arith.negf %54 : vector<16x1xf32>
    %56 = math.exp %55 : vector<16x1xf32>
    %cst_26 = arith.constant 1.000000e+00 : f32
    %57 = vector.broadcast %cst_26 : f32 to vector<16x1xf32>
    %58 = arith.addf %57, %56 : vector<16x1xf32>
    %59 = arith.divf %57, %58 : vector<16x1xf32>
    %60 = arith.mulf %54, %59 : vector<16x1xf32>
    %61 = arith.addf %44, %60 : vector<16x1xf32>
    %62 = arith.addf %45, %60 : vector<16x1xf32>
    %c2 = arith.constant 2 : index
    %c0_27 = arith.constant 0 : index
    %c0_28 = arith.constant 0 : index
    %63 = vector.load %arg4[%c2, %c0_27, %c0_28] : memref<3x16x16xbf16, #tpu.memory_space<vmem>>, vector<1x16x16xbf16>
    %64 = vector.shape_cast %63 : vector<1x16x16xbf16> to vector<16x16xbf16>
    %65 = arith.truncf %62 : vector<16x1xf32> to vector<16x1xbf16>
    %cst_29 = arith.constant dense<0.000000e+00> : vector<16x1xf32>
    %66 = tpu.matmul %64, %65, %cst_29 {dimension_numbers = #tpu.dot_dimension_numbers<[1], [0], [0], [1], [0, 0, 1, 1], [], []>} : vector<16x16xbf16>, vector<16x1xbf16>, vector<16x1xf32> -> vector<16x1xf32>
    %cst_30 = arith.constant 1.000000e+00 : f32
    %67 = vector.broadcast %cst_30 : f32 to vector<16x1xf32>
    %68 = arith.mulf %67, %66 : vector<16x1xf32>
    %cst_31 = arith.constant 2.500000e-01 : f32
    %69 = vector.broadcast %cst_31 : f32 to vector<16x1xf32>
    %70 = arith.mulf %69, %62 : vector<16x1xf32>
    %71 = arith.addf %68, %70 : vector<16x1xf32>
    %72 = arith.negf %71 : vector<16x1xf32>
    %73 = math.exp %72 : vector<16x1xf32>
    %cst_32 = arith.constant 1.000000e+00 : f32
    %74 = vector.broadcast %cst_32 : f32 to vector<16x1xf32>
    %75 = arith.addf %74, %73 : vector<16x1xf32>
    %76 = arith.divf %74, %75 : vector<16x1xf32>
    %77 = arith.mulf %71, %76 : vector<16x1xf32>
    %78 = arith.addf %61, %77 : vector<16x1xf32>
    %79 = vector.broadcast %78 : vector<16x1xf32> to vector<16x32xf32>
    %80 = arith.addf %23, %79 : vector<16x32xf32>
    %cst_33 = arith.constant 0.000000e+00 : f32
    %81 = vector.broadcast %cst_33 : f32 to vector<1x27x32xf32>
    %82 = tpu.concatenate %81, %22, %81 in 1 : vector<1x27x32xf32>, vector<1x16x32xf32>, vector<1x27x32xf32> -> vector<1x70x32xf32>
    %83 = vector.extract_strided_slice %82 {offsets = [0, 27, 0], sizes = [1, 16, 32], strides = [1, 1, 1]} : vector<1x70x32xf32> to vector<1x16x32xf32>
    %84 = vector.shape_cast %83 : vector<1x16x32xf32> to vector<16x32xf32>
    %85 = vector.extract_strided_slice %82 {offsets = [0, 26, 0], sizes = [1, 16, 32], strides = [1, 1, 1]} : vector<1x70x32xf32> to vector<1x16x32xf32>
    %86 = vector.shape_cast %85 : vector<1x16x32xf32> to vector<16x32xf32>
    %87 = vector.extract_strided_slice %82 {offsets = [0, 28, 0], sizes = [1, 16, 32], strides = [1, 1, 1]} : vector<1x70x32xf32> to vector<1x16x32xf32>
    %88 = vector.shape_cast %87 : vector<1x16x32xf32> to vector<16x32xf32>
    %89 = vector.extract_strided_slice %82 {offsets = [0, 24, 0], sizes = [1, 16, 32], strides = [1, 1, 1]} : vector<1x70x32xf32> to vector<1x16x32xf32>
    %90 = vector.shape_cast %89 : vector<1x16x32xf32> to vector<16x32xf32>
    %91 = vector.extract_strided_slice %82 {offsets = [0, 30, 0], sizes = [1, 16, 32], strides = [1, 1, 1]} : vector<1x70x32xf32> to vector<1x16x32xf32>
    %92 = vector.shape_cast %91 : vector<1x16x32xf32> to vector<16x32xf32>
    %93 = vector.extract_strided_slice %82 {offsets = [0, 18, 0], sizes = [1, 16, 32], strides = [1, 1, 1]} : vector<1x70x32xf32> to vector<1x16x32xf32>
    %94 = vector.shape_cast %93 : vector<1x16x32xf32> to vector<16x32xf32>
    %95 = vector.extract_strided_slice %82 {offsets = [0, 36, 0], sizes = [1, 16, 32], strides = [1, 1, 1]} : vector<1x70x32xf32> to vector<1x16x32xf32>
    %96 = vector.shape_cast %95 : vector<1x16x32xf32> to vector<16x32xf32>
    %97 = vector.extract_strided_slice %82 {offsets = [0, 0, 0], sizes = [1, 16, 32], strides = [1, 1, 1]} : vector<1x70x32xf32> to vector<1x16x32xf32>
    %98 = vector.shape_cast %97 : vector<1x16x32xf32> to vector<16x32xf32>
    %99 = vector.extract_strided_slice %82 {offsets = [0, 54, 0], sizes = [1, 16, 32], strides = [1, 1, 1]} : vector<1x70x32xf32> to vector<1x16x32xf32>
    %100 = vector.shape_cast %99 : vector<1x16x32xf32> to vector<16x32xf32>
    %101 = tpu.concatenate %84, %86, %88, %90, %92, %94, %96, %98, %100 in 1 : vector<16x32xf32>, vector<16x32xf32>, vector<16x32xf32>, vector<16x32xf32>, vector<16x32xf32>, vector<16x32xf32>, vector<16x32xf32>, vector<16x32xf32>, vector<16x32xf32> -> vector<16x288xf32>
    %102 = arith.truncf %101 : vector<16x288xf32> to vector<16x288xbf16>
    %c0_34 = arith.constant 0 : index
    %c0_35 = arith.constant 0 : index
    %103 = vector.load %arg7[%c0_34, %c0_35] : memref<288x32xbf16, #tpu.memory_space<vmem>>, vector<288x32xbf16>
    %cst_36 = arith.constant dense<0.000000e+00> : vector<16x32xf32>
    %104 = tpu.matmul %102, %103, %cst_36 {dimension_numbers = #tpu.dot_dimension_numbers<[1], [0], [0], [1], [0, 0, 1, 1], [], []>} : vector<16x288xbf16>, vector<288x32xbf16>, vector<16x32xf32> -> vector<16x32xf32>
    %c0_37 = arith.constant 0 : index
    %c0_38 = arith.constant 0 : index
    %105 = vector.load %arg8[%c0_37, %c0_38] : memref<8x32xf32, #tpu.memory_space<vmem>>, vector<1x32xf32>
    %106 = vector.broadcast %105 : vector<1x32xf32> to vector<16x32xf32>
    %107 = arith.addf %104, %106 : vector<16x32xf32>
    %108 = arith.addf %107, %23 : vector<16x32xf32>
    %cst_39 = arith.constant dense<0.000000e+00> : vector<16xf32>
    %109 = vector.multi_reduction <add>, %108, %cst_39 [1] : vector<16x32xf32> to vector<16xf32>
    %110 = vector.shape_cast %109 : vector<16xf32> to vector<16x1xf32>
    %cst_40 = arith.constant 3.200000e+01 : f32
    %111 = vector.broadcast %cst_40 : f32 to vector<16x1xf32>
    %112 = arith.divf %110, %111 : vector<16x1xf32>
    %113 = vector.broadcast %112 : vector<16x1xf32> to vector<16x32xf32>
    %114 = arith.subf %108, %113 : vector<16x32xf32>
    %115 = arith.mulf %114, %114 : vector<16x32xf32>
    %cst_41 = arith.constant dense<0.000000e+00> : vector<16xf32>
    %116 = vector.multi_reduction <add>, %115, %cst_41 [1] : vector<16x32xf32> to vector<16xf32>
    %117 = vector.shape_cast %116 : vector<16xf32> to vector<16x1xf32>
    %cst_42 = arith.constant 3.200000e+01 : f32
    %118 = vector.broadcast %cst_42 : f32 to vector<16x1xf32>
    %119 = arith.divf %117, %118 : vector<16x1xf32>
    %120 = vector.broadcast %112 : vector<16x1xf32> to vector<16x32xf32>
    %121 = arith.subf %108, %120 : vector<16x32xf32>
    %cst_43 = arith.constant 9.99999974E-6 : f32
    %122 = vector.broadcast %cst_43 : f32 to vector<16x1xf32>
    %123 = arith.addf %119, %122 : vector<16x1xf32>
    %124 = math.rsqrt %123 : vector<16x1xf32>
    %125 = vector.broadcast %124 : vector<16x1xf32> to vector<16x32xf32>
    %126 = arith.mulf %121, %125 : vector<16x32xf32>
    %c1_44 = arith.constant 1 : index
    %c0_45 = arith.constant 0 : index
    %127 = vector.load %arg8[%c1_44, %c0_45] : memref<8x32xf32, #tpu.memory_space<vmem>>, vector<1x32xf32>
    %128 = vector.broadcast %127 : vector<1x32xf32> to vector<16x32xf32>
    %129 = arith.mulf %126, %128 : vector<16x32xf32>
    %c2_46 = arith.constant 2 : index
    %c0_47 = arith.constant 0 : index
    %130 = vector.load %arg8[%c2_46, %c0_47] : memref<8x32xf32, #tpu.memory_space<vmem>>, vector<1x32xf32>
    %131 = vector.broadcast %130 : vector<1x32xf32> to vector<16x32xf32>
    %132 = arith.addf %129, %131 : vector<16x32xf32>
    %133 = tpu.concatenate %80, %132 in 1 : vector<16x32xf32>, vector<16x32xf32> -> vector<16x64xf32>
    %134 = arith.truncf %133 : vector<16x64xf32> to vector<16x64xbf16>
    %c0_48 = arith.constant 0 : index
    %c0_49 = arith.constant 0 : index
    %135 = vector.load %arg9[%c0_48, %c0_49] : memref<64x32xbf16, #tpu.memory_space<vmem>>, vector<64x32xbf16>
    %cst_50 = arith.constant dense<0.000000e+00> : vector<16x32xf32>
    %136 = tpu.matmul %134, %135, %cst_50 {dimension_numbers = #tpu.dot_dimension_numbers<[1], [0], [0], [1], [0, 0, 1, 1], [], []>} : vector<16x64xbf16>, vector<64x32xbf16>, vector<16x32xf32> -> vector<16x32xf32>
    %c3 = arith.constant 3 : index
    %c0_51 = arith.constant 0 : index
    %137 = vector.load %arg8[%c3, %c0_51] : memref<8x32xf32, #tpu.memory_space<vmem>>, vector<1x32xf32>
    %138 = vector.broadcast %137 : vector<1x32xf32> to vector<16x32xf32>
    %139 = arith.addf %136, %138 : vector<16x32xf32>
    %140 = arith.negf %139 : vector<16x32xf32>
    %141 = math.exp %140 : vector<16x32xf32>
    %cst_52 = arith.constant 1.000000e+00 : f32
    %142 = vector.broadcast %cst_52 : f32 to vector<16x32xf32>
    %143 = arith.addf %142, %141 : vector<16x32xf32>
    %144 = arith.divf %142, %143 : vector<16x32xf32>
    %145 = arith.mulf %139, %144 : vector<16x32xf32>
    %146 = arith.truncf %145 : vector<16x32xf32> to vector<16x32xbf16>
    %c0_53 = arith.constant 0 : index
    %c0_54 = arith.constant 0 : index
    %147 = vector.load %arg10[%c0_53, %c0_54] : memref<32x32xbf16, #tpu.memory_space<vmem>>, vector<32x32xbf16>
    %cst_55 = arith.constant dense<0.000000e+00> : vector<16x32xf32>
    %148 = tpu.matmul %146, %147, %cst_55 {dimension_numbers = #tpu.dot_dimension_numbers<[1], [0], [0], [1], [0, 0, 1, 1], [], []>} : vector<16x32xbf16>, vector<32x32xbf16>, vector<16x32xf32> -> vector<16x32xf32>
    %c4 = arith.constant 4 : index
    %c0_56 = arith.constant 0 : index
    %149 = vector.load %arg8[%c4, %c0_56] : memref<8x32xf32, #tpu.memory_space<vmem>>, vector<1x32xf32>
    %150 = vector.broadcast %149 : vector<1x32xf32> to vector<16x32xf32>
    %151 = arith.addf %148, %150 : vector<16x32xf32>
    %152 = arith.truncf %151 : vector<16x32xf32> to vector<16x32xbf16>
    %c0_57 = arith.constant 0 : index
    %c0_58 = arith.constant 0 : index
    %153 = vector.load %arg11[%c0_57, %c0_58] : memref<32x144xbf16, #tpu.memory_space<vmem>>, vector<32x144xbf16>
    %cst_59 = arith.constant dense<0.000000e+00> : vector<16x144xf32>
    %154 = tpu.matmul %152, %153, %cst_59 {dimension_numbers = #tpu.dot_dimension_numbers<[1], [0], [0], [1], [0, 0, 1, 1], [], []>} : vector<16x32xbf16>, vector<32x144xbf16>, vector<16x144xf32> -> vector<16x144xf32>
    %c0_60 = arith.constant 0 : index
    %c0_61 = arith.constant 0 : index
    %155 = vector.load %arg12[%c0_60, %c0_61] : memref<1x144xf32, #tpu.memory_space<vmem>>, vector<1x144xf32>
    %156 = vector.broadcast %155 : vector<1x144xf32> to vector<16x144xf32>
    %157 = arith.addf %154, %156 : vector<16x144xf32>
    %158 = arith.negf %157 : vector<16x144xf32>
    %159 = math.exp %158 : vector<16x144xf32>
    %cst_62 = arith.constant 1.000000e+00 : f32
    %160 = vector.broadcast %cst_62 : f32 to vector<16x144xf32>
    %161 = arith.addf %160, %159 : vector<16x144xf32>
    %162 = arith.divf %160, %161 : vector<16x144xf32>
    %163 = arith.mulf %157, %162 : vector<16x144xf32>
    %164 = vector.extract_strided_slice %163 {offsets = [0, 0], sizes = [16, 128], strides = [1, 1]} : vector<16x144xf32> to vector<16x128xf32>
    %165 = arith.truncf %164 : vector<16x128xf32> to vector<16x128xbf16>
    %c0_63 = arith.constant 0 : index
    %c0_64 = arith.constant 0 : index
    %166 = vector.load %arg13[%c0_63, %c0_64] : memref<128x256xbf16, #tpu.memory_space<vmem>>, vector<128x256xbf16>
    %cst_65 = arith.constant dense<0.000000e+00> : vector<16x256xf32>
    %167 = tpu.matmul %165, %166, %cst_65 {dimension_numbers = #tpu.dot_dimension_numbers<[1], [0], [0], [1], [0, 0, 1, 1], [], []>} : vector<16x128xbf16>, vector<128x256xbf16>, vector<16x256xf32> -> vector<16x256xf32>
    %c0_66 = arith.constant 0 : index
    %c0_67 = arith.constant 0 : index
    %168 = vector.load %arg14[%c0_66, %c0_67] : memref<1x256xf32, #tpu.memory_space<vmem>>, vector<1x256xf32>
    %169 = vector.broadcast %168 : vector<1x256xf32> to vector<16x256xf32>
    %170 = arith.addf %167, %169 : vector<16x256xf32>
    %171 = vector.shape_cast %170 : vector<16x256xf32> to vector<1x16x256xf32>
    %c0_68 = arith.constant 0 : index
    %c0_69 = arith.constant 0 : index
    %c0_70 = arith.constant 0 : index
    %172 = vector.load %arg15[%c0_68, %c0_69, %c0_70] : memref<1x16x256xf32, #tpu.memory_space<vmem>>, vector<1x16x256xf32>
    tpu.vector_store %arg15[%c0_68, %c0_69, %c0_70], %171 {strides = array<i32>} : memref<1x16x256xf32, #tpu.memory_space<vmem>>, vector<1x16x256xf32>,
    %173 = vector.extract_strided_slice %163 {offsets = [0, 128], sizes = [16, 16], strides = [1, 1]} : vector<16x144xf32> to vector<16x16xf32>
    %c5 = arith.constant 5 : index
    %c0_71 = arith.constant 0 : index
    %174 = vector.load %arg8[%c5, %c0_71] : memref<8x32xf32, #tpu.memory_space<vmem>>, vector<1x16xf32>
    %175 = vector.broadcast %174 : vector<1x16xf32> to vector<16x16xf32>
    %176 = arith.mulf %173, %175 : vector<16x16xf32>
    %cst_72 = arith.constant dense<0.000000e+00> : vector<16xf32>
    %177 = vector.multi_reduction <add>, %176, %cst_72 [1] : vector<16x16xf32> to vector<16xf32>
    %178 = vector.shape_cast %177 : vector<16xf32> to vector<16x1xf32>
    %c6 = arith.constant 6 : index
    %c0_73 = arith.constant 0 : index
    %179 = vector.load %arg8[%c6, %c0_73] : memref<8x32xf32, #tpu.memory_space<vmem>>, vector<1x1xf32>
    %180 = vector.broadcast %179 : vector<1x1xf32> to vector<16x1xf32>
    %181 = arith.addf %178, %180 : vector<16x1xf32>
    %182 = arith.negf %181 : vector<16x1xf32>
    %183 = math.exp %182 : vector<16x1xf32>
    %cst_74 = arith.constant 1.000000e+00 : f32
    %184 = vector.broadcast %cst_74 : f32 to vector<16x1xf32>
    %185 = arith.addf %184, %183 : vector<16x1xf32>
    %186 = arith.divf %184, %185 : vector<16x1xf32>
    %cst_75 = arith.constant 0.000000e+00 : f32
    %187 = vector.broadcast %cst_75 : f32 to vector<16x31xf32>
    %188 = tpu.concatenate %80, %132, %151, %186, %187 in 1 : vector<16x32xf32>, vector<16x32xf32>, vector<16x32xf32>, vector<16x1xf32>, vector<16x31xf32> -> vector<16x128xf32>
    %189 = vector.shape_cast %188 : vector<16x128xf32> to vector<1x16x128xf32>
    %c0_76 = arith.constant 0 : index
    %c0_77 = arith.constant 0 : index
    %c0_78 = arith.constant 0 : index
    %190 = vector.load %arg16[%c0_76, %c0_77, %c0_78] : memref<1x16x128xf32, #tpu.memory_space<vmem>>, vector<1x16x128xf32>
    tpu.vector_store %arg16[%c0_76, %c0_77, %c0_78], %189 {strides = array<i32>} : memref<1x16x128xf32, #tpu.memory_space<vmem>>, vector<1x16x128xf32>,
    return
  }
  func.func @transform_0(%arg0: i32) -> (i32, i32, i32) {
    %c0_i32 = arith.constant 0 : i32
    %c0_i32_0 = arith.constant 0 : i32
    %c0_i32_1 = arith.constant 0 : i32
    return %arg0, %c0_i32, %c0_i32_0 : i32, i32, i32
  }
  func.func @transform_1(%arg0: i32) -> (i32, i32, i32) {
    %c0_i32 = arith.constant 0 : i32
    %c0_i32_0 = arith.constant 0 : i32
    %c0_i32_1 = arith.constant 0 : i32
    return %arg0, %c0_i32, %c0_i32_0 : i32, i32, i32
  }
  func.func @transform_2(%arg0: i32) -> (i32, i32) {
    %c0_i32 = arith.constant 0 : i32
    %c0_i32_0 = arith.constant 0 : i32
    %c0_i32_1 = arith.constant 0 : i32
    return %c0_i32, %c0_i32_0 : i32, i32
  }
  func.func @transform_3(%arg0: i32) -> (i32, i32, i32) {
    %c0_i32 = arith.constant 0 : i32
    %c0_i32_0 = arith.constant 0 : i32
    %c0_i32_1 = arith.constant 0 : i32
    %c0_i32_2 = arith.constant 0 : i32
    return %c0_i32, %c0_i32_0, %c0_i32_1 : i32, i32, i32
  }
  func.func @transform_4(%arg0: i32) -> (i32, i32) {
    %c0_i32 = arith.constant 0 : i32
    %c0_i32_0 = arith.constant 0 : i32
    %c0_i32_1 = arith.constant 0 : i32
    return %c0_i32, %c0_i32_0 : i32, i32
  }
  func.func @transform_5(%arg0: i32) -> (i32, i32) {
    %c0_i32 = arith.constant 0 : i32
    %c0_i32_0 = arith.constant 0 : i32
    %c0_i32_1 = arith.constant 0 : i32
    return %c0_i32, %c0_i32_0 : i32, i32
  }
  func.func @transform_6(%arg0: i32) -> (i32, i32) {
    %c0_i32 = arith.constant 0 : i32
    %c0_i32_0 = arith.constant 0 : i32
    %c0_i32_1 = arith.constant 0 : i32
    return %c0_i32, %c0_i32_0 : i32, i32
  }
  func.func @transform_7(%arg0: i32) -> (i32, i32) {
    %c0_i32 = arith.constant 0 : i32
    %c0_i32_0 = arith.constant 0 : i32
    %c0_i32_1 = arith.constant 0 : i32
    return %c0_i32, %c0_i32_0 : i32, i32
  }
  func.func @transform_8(%arg0: i32) -> (i32, i32) {
    %c0_i32 = arith.constant 0 : i32
    %c0_i32_0 = arith.constant 0 : i32
    %c0_i32_1 = arith.constant 0 : i32
    return %c0_i32, %c0_i32_0 : i32, i32
  }
  func.func @transform_9(%arg0: i32) -> (i32, i32) {
    %c0_i32 = arith.constant 0 : i32
    %c0_i32_0 = arith.constant 0 : i32
    %c0_i32_1 = arith.constant 0 : i32
    return %c0_i32, %c0_i32_0 : i32, i32
  }
  func.func @transform_10(%arg0: i32) -> (i32, i32) {
    %c0_i32 = arith.constant 0 : i32
    %c0_i32_0 = arith.constant 0 : i32
    %c0_i32_1 = arith.constant 0 : i32
    return %c0_i32, %c0_i32_0 : i32, i32
  }
  func.func @transform_11(%arg0: i32) -> (i32, i32) {
    %c0_i32 = arith.constant 0 : i32
    %c0_i32_0 = arith.constant 0 : i32
    %c0_i32_1 = arith.constant 0 : i32
    return %c0_i32, %c0_i32_0 : i32, i32
  }
  func.func @transform_12(%arg0: i32) -> (i32, i32) {
    %c0_i32 = arith.constant 0 : i32
    %c0_i32_0 = arith.constant 0 : i32
    %c0_i32_1 = arith.constant 0 : i32
    return %c0_i32, %c0_i32_0 : i32, i32
  }
  func.func @transform_13(%arg0: i32) -> (i32, i32) {
    %c0_i32 = arith.constant 0 : i32
    %c0_i32_0 = arith.constant 0 : i32
    %c0_i32_1 = arith.constant 0 : i32
    return %c0_i32, %c0_i32_0 : i32, i32
  }
  func.func @transform_14(%arg0: i32) -> (i32, i32, i32) {
    %c0_i32 = arith.constant 0 : i32
    %c0_i32_0 = arith.constant 0 : i32
    %c0_i32_1 = arith.constant 0 : i32
    return %arg0, %c0_i32, %c0_i32_0 : i32, i32, i32
  }
  func.func @transform_15(%arg0: i32) -> (i32, i32, i32) {
    %c0_i32 = arith.constant 0 : i32
    %c0_i32_0 = arith.constant 0 : i32
    %c0_i32_1 = arith.constant 0 : i32
    return %arg0, %c0_i32, %c0_i32_0 : i32, i32, i32
  }
}

</mosaic_0001>

<bundles_post_ra>
// kernel: tpu_custom_call.1
= control target key start
LH: loop header
LB: loop body
LE: loop exit
PB: predicated region body
PF: predicated region fallthrough
CT: control target
= control target key end

     0   :  { %s3466_s0 = inlined_call_operand.vmem [shape: f32[2,16,32], index: 0, kind: input, shape index: {}]   ;;  %s3467_s1 = inlined_call_operand.vmem [shape: f32[2,1,48], index: 1, kind: input, shape index: {}]   ;;  %s3468_s2 = inlined_call_operand.hbm [shape: f32[16,32], index: 2, kind: input, shape index: {}]   ;;  %s3469_s3 = inlined_call_operand.hbm [shape: bf16[3,16,16], index: 3, kind: input, shape index: {}]   ;;  %s3470_s4 = inlined_call_operand.hbm [shape: bf16[48,96], index: 4, kind: input, shape index: {}]   ;;  %s3471_s5 = inlined_call_operand.vmem [shape: f32[1,96], index: 5, kind: input, shape index: {}]   ;;  %s3472_s6 = inlined_call_operand.vmem [shape: bf16[288,32], index: 6, kind: input, shape index: {}]   ;;  %s3473_s7 = inlined_call_operand.hbm [shape: f32[8,32], index: 7, kind: input, shape index: {}]   ;;  %s3474_s8 = inlined_call_operand.vmem [shape: bf16[64,32], index: 8, kind: input, shape index: {}]   ;;  %s3475_s9 = inlined_call_operand.hbm [shape: bf16[32,32], index: 9, kind: input, shape index: {}]   ;;  %s3476_s10 = inlined_call_operand.vmem [shape: bf16[32,144], index: 10, kind: input, shape index: {}]   ;;  %s3477_s11 = inlined_call_operand.vmem [shape: f32[1,144], index: 11, kind: input, shape index: {}]   ;;  %s3478_s12 = inlined_call_operand.vmem [shape: bf16[128,256], index: 12, kind: input, shape index: {}]   ;;  %s3479_s13 = inlined_call_operand.vmem [shape: f32[1,256], index: 13, kind: input, shape index: {}]   ;;  %s3480_s14 = inlined_call_operand.hbm [shape: f32[2,16,256], index: 14, kind: output, shape index: {0}]   ;;  %s3481_s15 = inlined_call_operand.hbm [shape: f32[2,16,128], index: 15, kind: output, shape index: {1}]  }
   0x1   :  { %3492 = sst [smem:[#allocation26_spill]] %s3468_s2 }
   0x2   :  { %3493 = sst [smem:[#allocation27_spill]] %s3469_s3 }
   0x3   :  { %3494 = sst [smem:[#allocation28_spill]] %s3473_s7 }
   0x4   :  { %3495 = sst [smem:[#allocation29_spill]] %s3479_s13 }
   0x5   :  { %3496 = sst [smem:[#allocation30_spill]] %s3480_s14 }
   0x6   :  { %3497 = sst [smem:[#allocation31_spill]] %s3481_s15 }
   0x7   :  { %21 = vsyncpa [#allocation3], 0 }
   0x8   :  { %22 = vsyncpa [#allocation6], 0 }
   0x9   :  { %23 = vsyncpa [#allocation9], 0 }
   0xa   :  { %24 = vsyncpa [#allocation4], 0 }
   0xb   :  { %26 = vsyncpa [#allocation4 + $0x1], 0 }
   0xc   :  { %27 = vsyncpa [#allocation13], 0 }
   0xd   :  { %29 = vsyncpa [#allocation13 + $0x1], 0  ;;  %s2908_s18 = smov 0   ;;  %s2910_s19 = smov 0  }
   0xe   :  { %s2912_s20 = smov 0   ;;  %s2914_s21 = smov 0  }
   0xf LB: > { %3498 = sst [smem:[#allocation19_spill]] %s2795_s18  ;;  %s2929_s22 = sadd.s32 4294967295, %s2807_s21   ;;  %s2807_s21 = sphi %s2914_s21, %s3521_s21   ;;  %s2803_s20 = sphi %s2912_s20, %s3523_s20   ;;  %s2799_s19 = sphi %s2910_s19, %s3525_s19   ;;  %s2795_s18 = sphi %s2908_s18, %s3524_s18  }
  0x10   : > { %3499 = sst [smem:[#allocation20_spill]] %s2803_s20  ;;  %s2033_s23 = sadd.s32 4294967294, %s2807_s21  }
  0x11   : > { %3500 = sst [smem:[#allocation21_spill]] %s2807_s21  ;;  %s2933_s24 = sadd.s32 1, %s2807_s21  }
  0x12   : > { %3501 = sst [smem:[#allocation22_spill]] %s2933_s24  ;;  %s346_s25 = sadd.s32 1, %s2803_s20 }
  0x13   : > { %s343_s26 = ssub.s32 %s2807_s21, %s2933_s24  ;;  %p356_p0 = scmp.ne.s32.totalorder %s2803_s20, %s2799_s19 }
  0x14   : > { %p344_p1 = scmp.eq.s32.totalorder %s343_s26, 0  ;;  %p357_p2 = scmp.eq.s32.totalorder %s2929_s22, 1 }
  0x15   : > { %p362_p3 = scmp.ne.s32.totalorder %s2799_s19, %s2795_s18  ;;  %p363_p4 = scmp.eq.s32.totalorder %s2033_s23, 1 }
  0x16   : > { %s2944_s27 = scalar_select %p344_p1, %s2803_s20, %s346_s25  }
  0x17   : > { %p2946_p5 = por %p357_p2, %p356_p0  ;;  %p2950_p6 = por %p363_p4, %p362_p3 }
  0x18   : > { %3502 = sst [smem:[#allocation23_spill]] %s2944_s27  ;;  %p2034_p7 = scmp.ge.s32.totalorder %s2807_s21, 1 }
  0x19   : > { %s3503_s28 = scalar_select %p2946_p5, 1, 0 }
  0x1a   : > { %s3505_s29 = scalar_select %p2950_p6, 1, 0 }
  0x1b   : > { %3504 = sst [smem:[#allocation24_spill]] %s3503_s28  ;;  %p396_p8 = scmp.lt.s32.totalorder %s2807_s21, 3 }
  0x1c   : > { %3506 = sst [smem:[#allocation25_spill]] %s3505_s29  ;;  %p2382_p9 = scmp.eq.s32.totalorder %s2929_s22, 0 }
  0x1d   : > { %p2957_p10 = pnand %p2034_p7, %p396_p8  ;;  %s3508_s3 = sld [smem:[#allocation27_spill]] }
  0x1e   : > { %s2809_s25 = smov [#allocation5]   ;;  %s3510_s7 = sld [smem:[#allocation28_spill]] }
  0x1f   : > { %p2359_p11 = pneg %p2957_p10  ;;  %s423_s26 = sshll.u32 %s2809_s25, 4  ;;  %s424_s26 = int_to_ptr.vmem [resolvable:$true] %s423_s26 }
  0x20   : > { %s2810_s16 = smov 64   ;;  %s2811_s17 = smov 4  }
  0x21   : > { %p2968_p12 = pnand %p2382_p9, %p2359_p11  ;;  %s3511_s2 = sld [smem:[#allocation26_spill]] }
  0x22   : > { %s2813_s20 = smov [#allocation2]   ;;  %s435_s14 = sshll.u32 %s3470_s4, 4  ;;  %s436_s14 = int_to_ptr.hbm [resolvable:$true] %s435_s14 }
  0x23   : > { %s421_s23 = sshll.u32 %s3508_s3, 4  ;;  %s2812_s3 = smov [#allocation8]   ;;  %s422_s23 = int_to_ptr.hbm [resolvable:$true] %s421_s23 }
  0x24   : > { %s456_s29 = sshll.u32 %s3510_s7, 4  ;;  %s458_s25 = sshll.u32 %s2812_s3, 4  ;;  %s457_s29 = int_to_ptr.hbm [resolvable:$true] %s456_s29  ;;  %s459_s25 = int_to_ptr.vmem [resolvable:$true] %s458_s25 }
  0x25   : > { %2365 = dma.hbm_to_vmem [thread:$0]  (!%p2968_p12), %s422_s23, 384, %s424_s26, [#allocation6], %s2810_s16, %s2810_s16, %s2811_s17  }
  0x26   : > { %2371 = dma.hbm_to_vmem [thread:$0]  (!%p2968_p12), %s457_s29, 128, %s459_s25, [#allocation9]  }
  0x27   : > { %s407_s15 = sshll.u32 %s3511_s2, 4  ;;  %s409_s24 = sshll.u32 %s2813_s20, 4  ;;  %s408_s15 = int_to_ptr.hbm [resolvable:$true] %s407_s15  ;;  %s410_s24 = int_to_ptr.vmem [resolvable:$true] %s409_s24 }
  0x28   : > { %s2814_s23 = smov 128   ;;  %s2815_s26 = smov 8  }
  0x29   : > { %2362 = dma.hbm_to_vmem [thread:$0]  (!%p2968_p12), %s408_s15, 256, %s410_s24, [#allocation3], %s2814_s23, %s2814_s23, %s2815_s26  }
  0x2a   : > { %s2816_s3 = smov [#allocation7]   ;;  %s470_s13 = sshll.u32 %s3475_s9, 4  ;;  %s471_s13 = int_to_ptr.hbm [resolvable:$true] %s470_s13 }
  0x2b   : > { %s437_s18 = sshll.u32 %s2816_s3, 4  ;;  %s2817_s29 = smov [#allocation10]   ;;  %s438_s18 = int_to_ptr.vmem [resolvable:$true] %s437_s18 }
  0x2c   : > { %2368 = dma.hbm_to_vmem [thread:$0]  (!%p2968_p12), %s436_s14, 384, %s438_s18, [#allocation6], %s2810_s16, %s2810_s16, %s2811_s17  }
  0x2d   : > { %s472_s25 = sshll.u32 %s2817_s29, 4  ;;  %514 = sbr.rel (%p2957_p10) target bundleno = 2200 (0x898), region = 76  ;;  %s473_s25 = int_to_ptr.vmem [resolvable:$true] %s472_s25 }
  0x2e   : > { %2374 = dma.hbm_to_vmem [thread:$0]  (!%p2968_p12), %s471_s13, 256, %s473_s25, [#allocation9], %s2810_s16, %s2810_s16, %s2811_s17  }
  0x32   : > { %2774 = dma.done.wait (%p2382_p9), [#allocation3], 256  }
  0x33   : > { %2776 = vsyncadd (%p2382_p9), [#allocation3], 4294967040 }
  0x34   : > { %2778 = dma.done.wait (%p2382_p9), [#allocation6], 768  }
  0x35   : > { %2780 = vsyncadd (%p2382_p9), [#allocation6], 4294966528 }
  0x36   : > { %2782 = dma.done.wait (%p2382_p9), [#allocation9], 384  }
  0x37   : > { %2784 = vsyncadd (%p2382_p9), [#allocation9], 4294966912  ;;  %p591_p13 = scmp.lt.s32.totalorder %s2929_s22, 1  ;;  %v2285_v0 = vld [vmem:[#allocation7 + $0x10] sm:$0xff]  ;;  %v2284_v1 = vld [vmem:[#allocation7 + $0x8] sm:$0xff]  ;;  %vm627_vm0 = vcmask 392192  }
  0x38   : > { %636 = vmatpush.bf16.msra.mxu0 %v2285_v0  ;;  %v2283_v2 = vld [vmem:[#allocation7] sm:$0xff]  ;;  %v608_v5 = vld [vmem:[%s3471_s5] sm:$0x1]  ;;  %s2818_s20 = smov 96   ;;  %s2819_s24 = smov 32   ;;  %vm919_vm1 = vcmask 1042432  }
  0x39   : > { %s592_s2 = scalar_select %p591_p13, %s2929_s22, 1  ;;  %v646_v7 = vld [vmem:[#allocation2] sm:$0xff]  ;;  %v647_v14 = vld [vmem:[#allocation2 + $0x8] sm:$0xff]  ;;  %v2820_v29 = vmov 0.0   ;;  %vm677_vm2 = vcmask 261120   ;;  %vm936_vm3 = vcmask 1040384  }
  0x3a   : > { %v1004_v30 = vrot.slane %v2820_v29, 5  ;;  %v988_v41 = vrot.slane %v2820_v29, 7  ;;  %vm951_vm4 = vcmask 1046528   ;;  %v996_v47 = vrot.slane %v2820_v29, 1  ;;  %s2821_s23 = smov 64   ;;  %s3391_s25 = sand.u32 1, %s2799_s19  }
  0x3b   : > { %s598_s14 = scalar_lea.vmem %s3467_s1, %s592_s2  ;;  %s2282_s15 = sshll.u32 %s592_s2, 4  ;;  %v2822_v0 = vmov 32.0   ;;  %vm703_vm6 = vcmask 130048   ;;  %vm1019_vm7 = vcmask 523264   ;;  %vm1023_vm8 = vcmask 785408  }
  0x3c   : > { %637 = vmatpush.bf16.msra.mxu0 %v2284_v1  ;;  %v600_v3 = vld [vmem:[%s598_s14] sm:$0x1]  ;;  %s595_s30 = scalar_lea.vmem %s3466_s0, %s2282_s15  ;;  %v2449_v31 = vpack.i.bf16 %v1004_v30, %v1004_v30  ;;  %2489 = vrcp.f32 %v2822_v0  ;;  %vm978_vm9 = vcmask 1044480   ;;  %vm1080_vm10 = vsmask.f32 6400  ;;  %s3514_s13 = sld [smem:[#allocation29_spill]] }
  0x3d   : > { %v601_v4 = vpack.c.bf16 %v600_v3, %v600_v3  ;;  %v644_v6 = vld [vmem:[%s595_s30] sm:$0xff]  ;;  %v645_v13 = vld [vmem:[%s595_s30 + $0x8] sm:$0xff]  ;;  %v2304_v3 = vld [vmem:[%s3472_s6 + $0x78] sm:$0xff]  ;;  %s2047_s14 = sshll.u32 %s3391_s25, 5  ;;  %s3515_s16 = sld [smem:[#allocation30_spill]] }
  0x3e   : > { %v648_v10 = vadd.f32 %v646_v7, %v644_v6  ;;  %v649_v16 = vadd.f32 %v647_v14, %v645_v13  ;;  %1259 = vmatpush.bf16.msra.mxu2 %v2304_v3  ;;  %v2303_v6 = vld [vmem:[%s3472_s6 + $0x70] sm:$0xff]  ;;  %v2302_v7 = vld [vmem:[%s3472_s6 + $0x68] sm:$0xff]  ;;  %v2300_v13 = vld [vmem:[%s3472_s6 + $0x58] sm:$0xff]  ;;  %s583_s15 = scalar_lea.vmem [#allocation11], %s2047_s14 }
  0x3f   : > { %s1859_s27 = sshll.u32 %s583_s15, 4  ;;  %s3404_s27 = int_to_ptr.vmem [resolvable:$true] %s1859_s27 }
  0x40   : > { %638 = vmatpush.bf16.msra.mxu0 %v2283_v2 }
  0x42   : > { %v2490_v1 = vpop.eup %2489  ;;  %1260 = vmatpush.bf16.msra.mxu2 %v2303_v6 }
  0x43   : > { %2063 = vmatmul.msk.bf16.vlgmr.msra.gmra.mxu0 %vm627_vm0, %v601_v4  ;;  %v685_v2 = vmul.f32 32.0, %v2490_v1  ;;  %vm689_vm5 = vweird.f32 %v2490_v1  ;;  %s2721_s7 = scalar_lea.hbm %s3515_s16, 64 }
  0x45   : > { %v686_v4 = vsub.f32 1.0, %v685_v2 }
  0x46   : > { %1261 = vmatpush.bf16.msra.mxu2 %v2302_v7 }
  0xc0   : > { %v640_v8 = vpop.f32.mrf.mxu0 }
  0xc1   : > { %v641_v9 = vadd.f32 %v640_v8, %v608_v5  ;;  %v687_v5 = vmul.f32 %v2490_v1, %v686_v4 }
  0xc3   : > { %v650_v11 = vperm.slane %v641_v9, 0  ;;  %v688_v8 = vadd.f32 %v2490_v1, %v687_v5 }
  0xc5   : > { %664 = vrot.lane.b32.xlu1 %v650_v11, %s2818_s20  ;;  %v651_v12 = vadd.f32 %v650_v11, %v648_v10  ;;  %v652_v17 = vadd.f32 %v650_v11, %v649_v16  ;;  %v3087_v9 = vsel %vm689_vm5, %v2490_v1, %v688_v8  ;;  %v2296_v16 = vld [vmem:[%s3472_s6 + $0x38] sm:$0xff] }
  0xc7   : > { %655 = vrot.lane.b32.xlu0 %v651_v12, %s2819_s24 }
  0xc8   : > { %v642_v15 = vpop.f32.mrf.mxu0 }
  0xcf   : > { %657 = vrot.lane.b32.xlu0 %v652_v17, %s2819_s24 }
 0x137   : > { %v665_v20 = vpop.permute.xlu1 %664 }
 0x139   : > { %v656_v18 = vpop.permute.xlu0 %655 }
 0x13a   : > { %v661_v19 = vmul.f32 %v656_v18, %v650_v11  ;;  %v2286_v18 = vld [vmem:[#allocation5] sm:$0xff] }
 0x13c   : > { %v3022_v21 = vadd.f32 %v665_v20, %v661_v19  ;;  %v2295_v19 = vld [vmem:[%s3472_s6 + $0x30] sm:$0xff] }
 0x13e   : > { %671 = vrot.lane.b32.xlu1 %v3022_v21, %s2818_s20  ;;  %v920_v26 = vrot.slane %v3022_v21, 5 }
 0x141   : > { %v658_v22 = vpop.permute.xlu0 %657 }
 0x142   : > { %v662_v23 = vmul.f32 %v658_v22, %v650_v11  ;;  %v2301_v11 = vld [vmem:[%s3472_s6 + $0x60] sm:$0xff]  ;;  %v2298_v22 = vld [vmem:[%s3472_s6 + $0x48] sm:$0xff] }
 0x143   : > { %1262 = vmatpush.bf16.msra.mxu2 %v2301_v11 }
 0x144   : > { %v3026_v24 = vadd.f32 %v665_v20, %v662_v23  ;;  %v2299_v20 = vld [vmem:[%s3472_s6 + $0x50] sm:$0xff] }
 0x146   : > { %v921_v25 = vrot.slane %v3026_v24, 5  ;;  %673 = vrot.lane.b32.xlu2 %v3026_v24, %s2818_s20 }
 0x147   : > { %1263 = vmatpush.bf16.msra.mxu2 %v2300_v13 }
 0x148   : > { %v922_v27 = vsel %vm919_vm1, %v920_v26, %v921_v25 }
 0x149   : > { %v2444_v28 = vpack.i.bf16 %v922_v27, %v920_v26  ;;  %v2293_v26 = vld [vmem:[%s3472_s6 + $0x20] sm:$0xff] }
 0x14a   : > { %v2297_v27 = vld [vmem:[%s3472_s6 + $0x40] sm:$0xff] }
 0x14b   : > { %2445 = vrot.lane.b32.xlu1 %v2444_v28, %s2818_s20  ;;  %1264 = vmatpush.bf16.msra.mxu2 %v2299_v20  ;;  %v2292_v28 = vld [vmem:[%s3472_s6 + $0x18] sm:$0xff] }
 0x14f   : > { %1265 = vmatpush.bf16.msra.mxu2 %v2298_v22 }
 0x153   : > { %927 = vrot.lane.b32.xlu1 %v921_v25, %s2818_s20  ;;  %v2294_v25 = vld [vmem:[%s3472_s6 + $0x28] sm:$0xff]  ;;  %1266 = vmatpush.bf16.msra.mxu2 %v2297_v27 }
 0x15b   : > { %2450 = vrot.lane.b32.xlu1 %v2449_v31, %s2818_s20 }
 0x1a0   : > { %v3037_v32 = vpop.permute.xlu2 %673 }
 0x1a1   : > { %v681_v33 = vsel %vm677_vm2, %v3037_v32, 0.0 }
 0x1a2   : > { %682 = vadd.xlane.f32.xlu0 %v681_v33  ;;  %v2291_v33 = vld [vmem:[%s3472_s6 + $0x10] sm:$0xff] }
 0x1b0   : > { %v3041_v34 = vpop.permute.xlu1 %671 }
 0x1b1   : > { %v678_v35 = vsel %vm677_vm2, %v3041_v34, 0.0 }
 0x1b2   : > { %679 = vadd.xlane.f32.xlu2 %v678_v35 }
 0x1bd   : > { %v2446_v36 = vpop.permute.xlu1 %2445 }
 0x1be   : > { %v3045_v37 = vunpack.i.h.bf16 %v2446_v36  ;;  %v2447_v38 = vunpack.i.l.bf16 %v2446_v36 }
 0x1c0   : > { %v3048_v39 = vsel %vm919_vm1, 0.0, %v2447_v38  ;;  %v938_v40 = vrot.slane %v3045_v37, 7  ;;  %v953_v44 = vrot.slane %v3045_v37, 1  ;;  %v967_v57 = vrot.slane %v3045_v37, 5 }
 0x1c1   : > { %v937_v42 = vrot.slane %v3048_v39, 7  ;;  %v952_v43 = vrot.slane %v3048_v39, 1  ;;  %v966_v61 = vrot.slane %v3048_v39, 5 }
 0x1c3   : > { %v939_v45 = vsel %vm936_vm3, %v937_v42, %v938_v40  ;;  %v954_v49 = vsel %vm951_vm4, %v952_v43, %v953_v44  ;;  %v989_v54 = vsel %vm936_vm3, %v988_v41, %v937_v42  ;;  %v968_v62 = vsel %vm919_vm1, %v966_v61, %v967_v57 }
 0x1c4   : > { %v2454_v46 = vpack.i.bf16 %v988_v41, %v939_v45  ;;  %v2469_v52 = vpack.i.bf16 %v954_v49, %v996_v47  ;;  %v2459_v55 = vpack.i.bf16 %v937_v42, %v989_v54  ;;  %v2474_v63 = vpack.i.bf16 %v968_v62, %v966_v61  ;;  %v2290_v41 = vld [vmem:[%s3472_s6 + $0x8] sm:$0xff]  ;;  %v2289_v45 = vld [vmem:[%s3472_s6] sm:$0xff] }
 0x1c5   : > { %v928_v48 = vpop.permute.xlu1 %927 }
 0x1c6   : > { %v3059_v50 = vsel %vm919_vm1, %v928_v48, 0.0  ;;  %2455 = vrot.lane.b32.xlu1 %v2454_v46, %s2819_s24  ;;  %v980_v48 = vrot.slane %v3045_v37, 3 }
 0x1c7   : > { %v940_v51 = vrot.slane %v3059_v50, 7  ;;  %v955_v56 = vrot.slane %v3059_v50, 1  ;;  %v982_v35 = vrot.slane %v3059_v50, 3 }
 0x1c9   : > { %v941_v53 = vsel %vm936_vm3, %v938_v40, %v940_v51  ;;  %v956_v58 = vsel %vm951_vm4, %v953_v44, %v955_v56  ;;  %v997_v59 = vsel %vm951_vm4, %v955_v56, %v996_v47  ;;  %v979_v47 = vrot.slane %v3048_v39, 3 }
 0x1ca   : > { %946 = vrot.lane.b32.xlu0 %v941_v53, %s2819_s24  ;;  %2470 = vrot.lane.b32.xlu2 %v2469_v52, %s2821_s23  ;;  %v2464_v60 = vpack.i.bf16 %v997_v59, %v956_v58 }
 0x1cd   : > { %v2451_v23 = vpop.permute.xlu1 %2450 }
 0x1ce   : > { %2460 = vrot.lane.b32.xlu1 %v2459_v55, %s2819_s24  ;;  %v2452_v42 = vunpack.i.l.bf16 %v2451_v23  ;;  %v2453_v53 = vunpack.i.h.bf16 %v2451_v23  ;;  %v981_v55 = vsel %vm978_vm9, %v979_v47, %v980_v48 }
 0x1d2   : > { %973 = vrot.lane.b32.xlu2 %v967_v57, %s2818_s20 }
 0x1d6   : > { %2465 = vrot.lane.b32.xlu1 %v2464_v60, %s2821_s23 }
 0x1de   : > { %961 = vrot.lane.b32.xlu1 %v955_v56, %s2821_s23  ;;  %v983_v56 = vsel %vm978_vm9, %v980_v48, %v982_v35 }
 0x1e6   : > { %2475 = vrot.lane.b32.xlu1 %v2474_v63, %s2818_s20 }
 0x215   : > { %v683_v10 = vpop.xlane.xlu0 %682 }
 0x216   : > { %v3096_v14 = vmul.f32 %v3087_v9, %v683_v10 }
 0x225   : > { %v680_v12 = vpop.xlane.xlu2 %679 }
 0x226   : > { %v3099_v15 = vmul.f32 %v3087_v9, %v680_v12 }
 0x228   : > { %v695_v17 = vpack.c.bf16 %v3096_v14, %v3099_v15 }
 0x22a   : > { %714 = vmatpush.bf16.msra.mxu1 %v695_v17 }
 0x22d   : > { %2068 = vmatmul.msk.bf16.vlgmr.msra.gmra.mxu1 %vm703_vm6, %v2286_v18  ;;  %v3135_v36 = vpop.permute.xlu2 %2470 }
 0x22e   : > { %1245 = vmatpush.bf16.msrb.mxu1 %v2296_v16  ;;  %v2472_v40 = vunpack.i.l.bf16 %v3135_v36 }
 0x232   : > { %1246 = vmatpush.bf16.msrb.mxu1 %v2295_v19 }
 0x235   : > { %v974_v17 = vpop.permute.xlu2 %973 }
 0x236   : > { %1247 = vmatpush.bf16.msrb.mxu1 %v2294_v25 }
 0x238   : > { %v3128_v30 = vpop.permute.xlu1 %2455 }
 0x239   : > { %v2457_v31 = vunpack.i.l.bf16 %v3128_v30  ;;  %v2458_v49 = vunpack.i.h.bf16 %v3128_v30 }
 0x23a   : > { %1248 = vmatpush.bf16.msrb.mxu1 %v2293_v26 }
 0x23b   : > { %v1029_v38 = vsel %vm677_vm2, %v982_v35, %v2457_v31  ;;  %v1027_v59 = vsel %vm677_vm2, %v981_v55, %v2458_v49  ;;  %v697_v55 = vmul.f32 0.25, %v3096_v14 }
 0x23c   : > { %v1032_v44 = vsel %vm1019_vm7, %v1029_v38, %v2472_v40  ;;  %v947_v3 = vpop.permute.xlu0 %946 }
 0x23d   : > { %v1035_v46 = vsel %vm1023_vm8, %v1032_v44, %v2452_v42  ;;  %v1018_v10 = vsel %vm677_vm2, %v3059_v50, %v947_v3  ;;  %v2473_v50 = vunpack.i.h.bf16 %v3135_v36 }
 0x23e   : > { %1249 = vmatpush.bf16.msrb.mxu1 %v2292_v28  ;;  %v1040_v52 = vpack.c.bf16 %v1035_v46, %v1035_v46  ;;  %v1017_v28 = vsel %vm677_vm2, %v3045_v37, %v2457_v31 }
 0x240   : > { %v2461_v43 = vpop.permute.xlu1 %2460  ;;  %v1107_v63 = vshrl.u32 %v1040_v52, 16  ;;  %v1110_v0 = vshll.u32 %v1040_v52, 16 }
 0x241   : > { %v2462_v51 = vunpack.i.l.bf16 %v2461_v43  ;;  %v2463_v18 = vunpack.i.h.bf16 %v2461_v43 }
 0x242   : > { %1250 = vmatpush.bf16.msrb.mxu1 %v2291_v33  ;;  %v1109_v7 = vrot.slane %v1107_v63, 1  ;;  %v1112_v8 = vrot.slane %v1110_v0, 2 }
 0x243   : > { %v1028_v60 = vsel %vm677_vm2, %v983_v56, %v2462_v51  ;;  %v1016_v26 = vsel %vm677_vm2, %v3048_v39, %v2463_v18  ;;  %v696_v51 = vmul.f32 0.25, %v3099_v15 }
 0x244   : > { %v1113_v22 = vor.u32 %v1112_v8, %v1109_v7 }
 0x246   : > { %1251 = vmatpush.bf16.msrb.mxu1 %v2290_v41  ;;  %v1020_v41 = vsel %vm1019_vm7, %v1016_v26, %v2473_v50 }
 0x248   : > { %v2466_v54 = vpop.permute.xlu1 %2465 }
 0x249   : > { %v2468_v57 = vunpack.i.h.bf16 %v2466_v54  ;;  %v2467_v58 = vunpack.i.l.bf16 %v2466_v54 }
 0x24a   : > { %1252 = vmatpush.bf16.msrb.mxu1 %v2289_v45 }
 0x24b   : > { %v1030_v61 = vsel %vm1019_vm7, %v1027_v59, %v2467_v58  ;;  %v1031_v62 = vsel %vm1019_vm7, %v1028_v60, %v2468_v57  ;;  %v1021_v35 = vsel %vm1019_vm7, %v1017_v28, %v2467_v58  ;;  %v2287_v28 = vld [vmem:[#allocation5 + $0x8] sm:$0xff] }
 0x24c   : > { %v1033_v1 = vsel %vm1023_vm8, %v1030_v61, %v2452_v42  ;;  %v1034_v2 = vsel %vm1023_vm8, %v1031_v62, %v2453_v53 }
 0x24d   : > { %v1037_v4 = vpack.c.bf16 %v1034_v2, %v1033_v1 }
 0x24f   : > { %v1099_v5 = vshrl.u32 %v1037_v4, 16  ;;  %v1102_v6 = vshll.u32 %v1037_v4, 16 }
 0x250   : > { %v962_v11 = vpop.permute.xlu1 %961 }
 0x251   : > { %v1022_v12 = vsel %vm1019_vm7, %v1018_v10, %v962_v11  ;;  %v1101_v13 = vrot.slane %v1099_v5, 1  ;;  %v1104_v16 = vrot.slane %v1102_v6, 2 }
 0x252   : > { %v1026_v19 = vsel %vm1023_vm8, %v1022_v12, %v974_v17 }
 0x253   : > { %v1105_v20 = vor.u32 %v1104_v16, %v1101_v13  ;;  %v1039_v25 = vpack.c.bf16 %v1026_v19, %v1026_v19 }
 0x255   : > { %v1114_v23 = vsel %vm1080_vm10, %v1105_v20, %v1113_v22  ;;  %v1090_v38 = vshrl.u32 %v1039_v25, 16  ;;  %v1093_v40 = vshll.u32 %v1039_v25, 16 }
 0x256   : > { %1267 = vmatmul.bf16.vlgmr.msra.gmra.mxu2 %v1114_v23 }
 0x257   : > { %v1092_v39 = vrot.slane %v1090_v38, 1  ;;  %v1095_v45 = vrot.slane %v1093_v40, 2 }
 0x258   : > { %v2476_v27 = vpop.permute.xlu1 %2475 }
 0x259   : > { %v2478_v30 = vunpack.i.h.bf16 %v2476_v27  ;;  %v2477_v33 = vunpack.i.l.bf16 %v2476_v27  ;;  %v1096_v31 = vor.u32 %v1095_v45, %v1092_v39 }
 0x25b   : > { %v1024_v42 = vsel %vm1023_vm8, %v1020_v41, %v2477_v33  ;;  %v1025_v43 = vsel %vm1023_vm8, %v1021_v35, %v2478_v30 }
 0x25c   : > { %v1036_v44 = vpack.c.bf16 %v1025_v43, %v1024_v42 }
 0x25e   : > { %v1082_v36 = vshrl.u32 %v1036_v44, 16  ;;  %v1085_v46 = vshll.u32 %v1036_v44, 16 }
 0x260   : > { %v1084_v47 = vrot.slane %v1082_v36, 1  ;;  %v1087_v48 = vrot.slane %v1085_v46, 2 }
 0x262   : > { %v1088_v37 = vor.u32 %v1087_v48, %v1084_v47 }
 0x264   : > { %v1097_v49 = vsel %vm1080_vm10, %v1088_v37, %v1096_v31 }
 0x265   : > { %1253 = vmatmul.bf16.vlgmr.msrb.gmra.mxu1 %v1097_v49 }
 0x2aa   : > { %v716_v52 = vpop.f32.mrf.mxu1 }
 0x2ab   : > { %v717_v53 = vadd.f32 %v716_v52, %v696_v51 }
 0x2ad   : > { %v2069_v54 = vmul.f32 -1.442695, %v717_v53 }
 0x2af   : > { %2491 = vpow2.f32 %v2069_v54 }
 0x2b2   : > { %v718_v56 = vpop.f32.mrf.mxu1 }
 0x2b3   : > { %v719_v57 = vadd.f32 %v718_v56, %v697_v55 }
 0x2b5   : > { %v2492_v58 = vpop.eup %2491  ;;  %v2070_v59 = vmul.f32 -1.442695, %v719_v57 }
 0x2b6   : > { %v727_v60 = vadd.f32 1.0, %v2492_v58 }
 0x2b7   : > { %2493 = vpow2.f32 %v2070_v59 }
 0x2b8   : > { %2495 = vrcp.f32 %v727_v60  ;;  %v740_v5 = vand.u32 2147483648, %v727_v60  ;;  %vm734_vm12 = vweird.f32 %v727_v60  ;;  %v738_v6 = vand.u32 2147483647, %v727_v60 }
 0x2ba   : > { %v741_v11 = vor.u32 1.1754944e-38, %v740_v5  ;;  %vm739_vm14 = vcmp.eq.f32.partialorder %v738_v6, 8.507059e+37  ;;  %v2288_v5 = vld [vmem:[#allocation5 + $0x10] sm:$0xff]  ;;  %v1012_v6 = vrot.slane %v2820_v29, 3 }
 0x2bd   : > { %v2494_v61 = vpop.eup %2493 }
 0x2be   : > { %v2496_v62 = vpop.eup %2495  ;;  %v728_v63 = vadd.f32 1.0, %v2494_v61 }
 0x2bf   : > { %v730_v0 = vmul.f32 %v2496_v62, %v727_v60  ;;  %vm735_vm11 = vweird.f32 %v2496_v62 }
 0x2c0   : > { %2497 = vrcp.f32 %v728_v63  ;;  %vm736_vm13 = vmor %vm734_vm12, %vm735_vm11  ;;  %v755_v12 = vand.u32 2147483648, %v728_v63  ;;  %v753_v16 = vand.u32 2147483647, %v728_v63  ;;  %vm749_vm0 = vweird.f32 %v728_v63 }
 0x2c1   : > { %v731_v1 = vsub.f32 1.0, %v730_v0 }
 0x2c2   : > { %v756_v19 = vor.u32 1.1754944e-38, %v755_v12  ;;  %vm754_vm3 = vcmp.eq.f32.partialorder %v753_v16, 8.507059e+37 }
 0x2c3   : > { %v732_v2 = vmul.f32 %v2496_v62, %v731_v1 }
 0x2c5   : > { %v733_v3 = vadd.f32 %v2496_v62, %v732_v2 }
 0x2c6   : > { %v2498_v4 = vpop.eup %2497 }
 0x2c7   : > { %v745_v7 = vmul.f32 %v2498_v4, %v728_v63  ;;  %v737_v8 = vsel %vm736_vm13, %v2496_v62, %v733_v3  ;;  %vm750_vm15 = vweird.f32 %v2498_v4  ;;  %v2306_v3 = vld [vmem:[%s3472_s6 + $0x88] sm:$0xff] }
 0x2c8   : > { %v742_v17 = vsel %vm739_vm14, %v741_v11, %v737_v8  ;;  %vm751_vm1 = vmor %vm749_vm0, %vm750_vm15  ;;  %v1038_v8 = vpack.c.bf16 %v1012_v6, %v1012_v6 }
 0x2c9   : > { %v746_v10 = vsub.f32 1.0, %v745_v7  ;;  %v3173_v20 = vmul.f32 %v742_v17, %v717_v53  ;;  %v2305_v7 = vld [vmem:[%s3472_s6 + $0x80] sm:$0xff] }
 0x2ca   : > { %v1119_v11 = vshll.u32 %v1038_v8, 16 }
 0x2cb   : > { %v747_v13 = vmul.f32 %v2498_v4, %v746_v10  ;;  %v763_v26 = vadd.f32 %v3173_v20, %v3099_v15  ;;  %v1116_v10 = vshrl.u32 %v1038_v8, 16 }
 0x2cd   : > { %v748_v18 = vadd.f32 %v2498_v4, %v747_v13  ;;  %v769_v30 = vmul.f32 0.25, %v763_v26  ;;  %v1118_v12 = vrot.slane %v1116_v10, 1  ;;  %v1121_v13 = vrot.slane %v1119_v11, 2 }
 0x2cf   : > { %v752_v22 = vsel %vm751_vm1, %v2498_v4, %v748_v18  ;;  %v1122_v16 = vor.u32 %v1121_v13, %v1118_v12 }
 0x2d0   : > { %v757_v23 = vsel %vm754_vm3, %v756_v19, %v752_v22 }
 0x2d1   : > { %v3175_v25 = vmul.f32 %v757_v23, %v719_v57  ;;  %v2482_v23 = vld [vmem:[#allocation8] ss:$0 sm:$0xff] }
 0x2d3   : > { %v764_v50 = vadd.f32 %v3175_v25, %v3096_v14 }
 0x2d5   : > { %v768_v27 = vpack.c.bf16 %v764_v50, %v763_v26  ;;  %v770_v40 = vmul.f32 0.25, %v764_v50 }
 0x2d7   : > { %786 = vmatpush.bf16.msrb.mxu0 %v768_v27  ;;  %v2823_v27 = vmov 0  }
 0x2d8   : > { %2479 = vset.pattern.permute.xlu1 %v2823_v27  ;;  %2480 = vset.pattern.permute.xlu2 %v2823_v27 }
 0x2d9   : > { %2481 = vset.pattern.permute.xlu0 %v2823_v27 }
 0x2da   : > { %2075 = vmatmul.msk.bf16.vlgmr.msrb.gmra.mxu0 %vm703_vm6, %v2287_v28 }
 0x2e2   : > { %v1254_v22 = vpop.f32.mrf.mxu1 }
 0x357   : > { %v788_v33 = vpop.f32.mrf.mxu0 }
 0x358   : > { %v789_v35 = vadd.f32 %v788_v33, %v769_v30  ;;  %v1255_v33 = vadd.f32 %v2482_v23, %v1254_v22 }
 0x35a   : > { %v2076_v38 = vmul.f32 -1.442695, %v789_v35 }
 0x35c   : > { %2499 = vpow2.f32 %v2076_v38  ;;  %v1268_v38 = vpop.f32.mrf.mxu2 }
 0x35f   : > { %v790_v41 = vpop.f32.mrf.mxu0 }
 0x360   : > { %v791_v42 = vadd.f32 %v790_v41, %v770_v40  ;;  %v1269_v41 = vadd.f32 %v1268_v38, %v1255_v33 }
 0x362   : > { %v2500_v43 = vpop.eup %2499  ;;  %v2077_v44 = vmul.f32 -1.442695, %v791_v42 }
 0x363   : > { %v799_v39 = vadd.f32 1.0, %v2500_v43 }
 0x364   : > { %2501 = vpow2.f32 %v2077_v44 }
 0x365   : > { %2503 = vrcp.f32 %v799_v39  ;;  %v812_v31 = vand.u32 2147483648, %v799_v39  ;;  %vm806_vm5 = vweird.f32 %v799_v39  ;;  %v810_v49 = vand.u32 2147483647, %v799_v39 }
 0x367   : > { %v813_v54 = vor.u32 1.1754944e-38, %v812_v31  ;;  %vm811_vm10 = vcmp.eq.f32.partialorder %v810_v49, 8.507059e+37 }
 0x36a   : > { %v2502_v15 = vpop.eup %2501 }
 0x36b   : > { %v2504_v14 = vpop.eup %2503  ;;  %v800_v45 = vadd.f32 1.0, %v2502_v15 }
 0x36c   : > { %v802_v36 = vmul.f32 %v2504_v14, %v799_v39  ;;  %vm807_vm4 = vweird.f32 %v2504_v14 }
 0x36d   : > { %2505 = vrcp.f32 %v800_v45  ;;  %vm808_vm9 = vmor %vm806_vm5, %vm807_vm4  ;;  %v827_v55 = vand.u32 2147483648, %v800_v45  ;;  %v825_v57 = vand.u32 2147483647, %v800_v45  ;;  %vm821_vm12 = vweird.f32 %v800_v45 }
 0x36e   : > { %v803_v46 = vsub.f32 1.0, %v802_v36 }
 0x36f   : > { %v828_v60 = vor.u32 1.1754944e-38, %v827_v55  ;;  %vm826_vm14 = vcmp.eq.f32.partialorder %v825_v57, 8.507059e+37 }
 0x370   : > { %v804_v47 = vmul.f32 %v2504_v14, %v803_v46 }
 0x372   : > { %v805_v48 = vadd.f32 %v2504_v14, %v804_v47 }
 0x373   : > { %v2506_v37 = vpop.eup %2505 }
 0x374   : > { %v817_v51 = vmul.f32 %v2506_v37, %v800_v45  ;;  %v809_v52 = vsel %vm808_vm9, %v2504_v14, %v805_v48  ;;  %vm822_vm11 = vweird.f32 %v2506_v37  ;;  %v1270_v48 = vpop.f32.mrf.mxu2 }
 0x375   : > { %v814_v58 = vsel %vm811_vm10, %v813_v54, %v809_v52  ;;  %vm823_vm13 = vmor %vm821_vm12, %vm822_vm11 }
 0x376   : > { %v818_v53 = vsub.f32 1.0, %v817_v51  ;;  %v3182_v61 = vmul.f32 %v814_v58, %v789_v35 }
 0x378   : > { %v819_v56 = vmul.f32 %v2506_v37, %v818_v53  ;;  %v835_v1 = vadd.f32 %v3182_v61, %v763_v26 }
 0x37a   : > { %v820_v59 = vadd.f32 %v2506_v37, %v819_v56  ;;  %v841_v17 = vmul.f32 0.25, %v835_v1 }
 0x37c   : > { %v824_v62 = vsel %vm823_vm13, %v2506_v37, %v820_v59 }
 0x37d   : > { %v829_v63 = vsel %vm826_vm14, %v828_v60, %v824_v62 }
 0x37e   : > { %v3184_v0 = vmul.f32 %v829_v63, %v791_v42  ;;  %v1256_v42 = vpop.f32.mrf.mxu1  ;;  %v833_v63 = vadd.f32 %v3182_v61, %v3173_v20 }
 0x37f   : > { %v1257_v15 = vadd.f32 %v2482_v23, %v1256_v42 }
 0x380   : > { %v836_v2 = vadd.f32 %v3184_v0, %v764_v50  ;;  %v834_v11 = vadd.f32 %v3184_v0, %v3175_v25 }
 0x381   : > { %v1271_v31 = vadd.f32 %v1270_v48, %v1257_v15 }
 0x382   : > { %v840_v4 = vpack.c.bf16 %v836_v2, %v835_v1  ;;  %v842_v26 = vmul.f32 0.25, %v836_v2 }
 0x384   : > { %858 = vmatpush.bf16.msra.mxu3 %v840_v4 }
 0x387   : > { %2082 = vmatmul.msk.bf16.vlgmr.msra.gmra.mxu3 %vm703_vm6, %v2288_v5 }
 0x388   : > { %1279 = vmatpush.bf16.msrb.mxu3 %v2306_v3 }
 0x38c   : > { %1280 = vmatpush.bf16.msrb.mxu3 %v2305_v7 }
 0x397   : > { %2157 = vmatmul.msk.bf16.vlgmr.msrb.gmra.mxu3 %vm677_vm2, %v1122_v16 }
 0x40a   : > { %v860_v18 = vpop.f32.mrf.mxu3 }
 0x40b   : > { %v861_v29 = vadd.f32 %v860_v18, %v841_v17 }
 0x40d   : > { %v2083_v19 = vmul.f32 -1.442695, %v861_v29 }
 0x40f   : > { %2507 = vpow2.f32 %v2083_v19 }
 0x412   : > { %v862_v50 = vpop.f32.mrf.mxu3 }
 0x413   : > { %v863_v28 = vadd.f32 %v862_v50, %v842_v26 }
 0x415   : > { %v2508_v30 = vpop.eup %2507  ;;  %v2084_v35 = vmul.f32 -1.442695, %v863_v28 }
 0x416   : > { %v871_v40 = vadd.f32 1.0, %v2508_v30 }
 0x417   : > { %2509 = vpow2.f32 %v2084_v35 }
 0x418   : > { %2511 = vrcp.f32 %v871_v40  ;;  %v884_v49 = vand.u32 2147483648, %v871_v40  ;;  %v882_v53 = vand.u32 2147483647, %v871_v40  ;;  %vm878_vm0 = vweird.f32 %v871_v40 }
 0x41a   : > { %v1282_v43 = vpop.f32.mrf.mxu3  ;;  %v885_v57 = vor.u32 1.1754944e-38, %v884_v49  ;;  %vm883_vm3 = vcmp.eq.f32.partialorder %v882_v53, 8.507059e+37 }
 0x41b   : > { %v1283_v44 = vadd.f32 %v1282_v43, %v1269_v41 }
 0x41d   : > { %v2510_v39 = vpop.eup %2509  ;;  %v1287_v14 = vadd.f32 %v1283_v44, %v3041_v34 }
 0x41e   : > { %v2512_v45 = vpop.eup %2511  ;;  %v872_v36 = vadd.f32 1.0, %v2510_v39 }
 0x41f   : > { %v874_v46 = vmul.f32 %v2512_v45, %v871_v40  ;;  %v1289_v47 = vsel %vm677_vm2, %v1287_v14, 0.0  ;;  %vm879_vm15 = vweird.f32 %v2512_v45 }
 0x420   : > { %2513 = vrcp.f32 %v872_v36  ;;  %1290 = vadd.xlane.f32.xlu0 %v1289_v47  ;;  %vm880_vm1 = vmor %vm878_vm0, %vm879_vm15  ;;  %v899_v3 = vand.u32 2147483648, %v872_v36  ;;  %v897_v5 = vand.u32 2147483647, %v872_v36  ;;  %vm893_vm5 = vweird.f32 %v872_v36 }
 0x421   : > { %v875_v37 = vsub.f32 1.0, %v874_v46 }
 0x422   : > { %v1284_v51 = vpop.f32.mrf.mxu3  ;;  %v900_v7 = vor.u32 1.1754944e-38, %v899_v3  ;;  %vm898_vm10 = vcmp.eq.f32.partialorder %v897_v5, 8.507059e+37  ;;  %v2485_v3 = vld [vmem:[#allocation8 + $0x3] ss:$0 sm:$0xff] }
 0x423   : > { %v876_v52 = vmul.f32 %v2512_v45, %v875_v37  ;;  %v1285_v54 = vadd.f32 %v1284_v51, %v1271_v31 }
 0x425   : > { %v877_v55 = vadd.f32 %v2512_v45, %v876_v52  ;;  %v1288_v34 = vadd.f32 %v1285_v54, %v3037_v32 }
 0x426   : > { %v2514_v56 = vpop.eup %2513 }
 0x427   : > { %v881_v58 = vsel %vm880_vm1, %v2512_v45, %v877_v55  ;;  %v889_v59 = vmul.f32 %v2514_v56, %v872_v36  ;;  %v1292_v60 = vsel %vm677_vm2, %v1288_v34, 0.0  ;;  %vm894_vm4 = vweird.f32 %v2514_v56  ;;  %v2483_v45 = vld [vmem:[#allocation8 + $0x1] ss:$0 sm:$0xff]  ;;  %v2310_v55 = vld [vmem:[%s3474_s8 + $0x18] sm:$0xff] }
 0x428   : > { %v886_v62 = vsel %vm883_vm3, %v885_v57, %v881_v58  ;;  %1293 = vadd.xlane.f32.xlu1 %v1292_v60  ;;  %vm895_vm9 = vmor %vm893_vm5, %vm894_vm4  ;;  %1401 = vmatpush.bf16.msra.mxu0 %v2310_v55  ;;  %v2307_v57 = vld [vmem:[%s3474_s8] sm:$0xff] }
 0x429   : > { %v903_v1 = vmul.f32 %v886_v62, %v861_v29  ;;  %v890_v2 = vsub.f32 1.0, %v889_v59 }
 0x42b   : > { %v891_v4 = vmul.f32 %v2514_v56, %v890_v2  ;;  %v905_v32 = vadd.f32 %v903_v1, %v833_v63 }
 0x42d   : > { %v892_v6 = vadd.f32 %v2514_v56, %v891_v4 }
 0x42f   : > { %v896_v8 = vsel %vm895_vm9, %v2514_v56, %v892_v6  ;;  %v2308_v56 = vld [vmem:[%s3474_s8 + $0x8] sm:$0xff]  ;;  %v2312_v6 = vld [vmem:[#allocation10 + $0x8] sm:$0xff] }
 0x430   : > { %v901_v10 = vsel %vm898_vm10, %v900_v7, %v896_v8  ;;  %1479 = vmatpush.bf16.msra.mxu3 %v2312_v6  ;;  %v2311_v8 = vld [vmem:[#allocation10] sm:$0xff]  ;;  %v2250_v6 = vld [vmem:[%s3478_s12 + $0x50] sm:$0xf] }
 0x431   : > { %v904_v12 = vmul.f32 %v901_v10, %v863_v28 }
 0x433   : > { %v906_v13 = vadd.f32 %v904_v12, %v834_v11 }
 0x434   : > { %1480 = vmatpush.bf16.msra.mxu3 %v2311_v8  ;;  %v2327_v8 = vld [vmem:[%s3478_s12 + $0x54] sm:$0xf] }
 0x441   : > { %909 = vperm.xlu1 %2479, %v905_v32  }
 0x493   : > { %v1291_v20 = vpop.xlane.xlu0 %1290 }
 0x494   : > { %v1295_v61 = vmul.f32 %v1291_v20, %v3087_v9 }
 0x496   : > { %v1297_v16 = vsub.f32 %v1287_v14, %v1295_v61 }
 0x498   : > { %v1299_v17 = vmul.f32 %v1297_v16, %v1297_v16 }
 0x49a   : > { %v1301_v18 = vsel %vm677_vm2, %v1299_v17, 0.0 }
 0x49b   : > { %v1294_v29 = vpop.xlane.xlu1 %1293  ;;  %1302 = vadd.xlane.f32.xlu2 %v1301_v18 }
 0x49c   : > { %v1296_v19 = vmul.f32 %v1294_v29, %v3087_v9 }
 0x49e   : > { %v1298_v22 = vsub.f32 %v1288_v34, %v1296_v19  ;;  %v2309_v34 = vld [vmem:[%s3474_s8 + $0x10] sm:$0xff] }
 0x49f   : > { %1402 = vmatpush.bf16.msra.mxu0 %v2309_v34  ;;  %v2266_v34 = vld [vmem:[%s3478_s12 + $0x70] sm:$0xf] }
 0x4a0   : > { %v1300_v23 = vmul.f32 %v1298_v22, %v1298_v22 }
 0x4a2   : > { %v1304_v26 = vsel %vm677_vm2, %v1300_v23, 0.0 }
 0x4a3   : > { %1305 = vadd.xlane.f32.xlu0 %v1304_v26  ;;  %1403 = vmatpush.bf16.msra.mxu0 %v2308_v56  ;;  %v2332_v56 = vld [vmem:[%s3478_s12 + $0x74] sm:$0xf0] }
 0x4a7   : > { %1404 = vmatpush.bf16.msra.mxu0 %v2307_v57  ;;  %v2331_v57 = vld [vmem:[%s3478_s12 + $0x74] sm:$0xf] }
 0x4b3   : > { %v910_v25 = vpop.permute.xlu1 %909  ;;  %914 = vperm.xlu2 %2480, %v906_v13  }
 0x4b4   : > { %v917_v0 = vadd.f32 %v910_v25, %v3022_v21 }
 0x4b7   : > { %1343 = vrot.lane.b32.xlu0 %v917_v0, %s2818_s20 }
 0x50e   : > { %v1303_v50 = vpop.xlane.xlu2 %1302 }
 0x50f   : > { %v1307_v27 = vmul.f32 %v1303_v50, %v3087_v9 }
 0x511   : > { %v1309_v28 = vadd.f32 1e-05, %v1307_v27 }
 0x513   : > { %2515 = vrsqrt.f32 %v1309_v28  ;;  %vm1317_vm12 = vweird.f32 %v1309_v28 }
 0x516   : > { %v915_v30 = vpop.permute.xlu2 %914  ;;  %v1306_v33 = vpop.xlane.xlu0 %1305 }
 0x517   : > { %v918_v35 = vadd.f32 %v915_v30, %v3026_v24  ;;  %v1308_v38 = vmul.f32 %v1306_v33, %v3087_v9  ;;  %v2484_v9 = vld [vmem:[#allocation8 + $0x2] ss:$0 sm:$0xff] }
 0x519   : > { %v2516_v40 = vpop.eup %2515  ;;  %v1310_v41 = vadd.f32 1e-05, %v1308_v38  ;;  %1345 = vrot.lane.b32.xlu2 %v918_v35, %s2818_s20 }
 0x51a   : > { %v1312_v42 = vmul.f32 %v2516_v40, %v1309_v28  ;;  %vm1318_vm11 = vweird.f32 %v2516_v40 }
 0x51b   : > { %2517 = vrsqrt.f32 %v1310_v41  ;;  %vm1319_vm13 = vmor %vm1317_vm12, %vm1318_vm11  ;;  %vm1327_vm15 = vweird.f32 %v1310_v41 }
 0x51c   : > { %v1313_v21 = vmul.f32 %v2516_v40, %v1312_v42 }
 0x51e   : > { %v1314_v43 = vmul.f32 0.5, %v1313_v21 }
 0x520   : > { %v1315_v44 = vsub.f32 1.5, %v1314_v43 }
 0x521   : > { %v2518_v39 = vpop.eup %2517 }
 0x522   : > { %v1316_v15 = vmul.f32 %v2516_v40, %v1315_v44  ;;  %v1322_v14 = vmul.f32 %v2518_v39, %v1310_v41  ;;  %vm1328_vm14 = vweird.f32 %v2518_v39 }
 0x523   : > { %vm1329_vm0 = vmor %vm1327_vm15, %vm1328_vm14 }
 0x524   : > { %v1320_v36 = vsel %vm1319_vm13, %v2516_v40, %v1316_v15  ;;  %v1323_v24 = vmul.f32 %v2518_v39, %v1322_v14  ;;  %v2316_v15 = vld [vmem:[%s3476_s10 + $0x14] sm:$0xf0]  ;;  %v2315_v14 = vld [vmem:[%s3476_s10 + $0x14] sm:$0xf] }
 0x525   : > { %v1331_v46 = vmul.f32 %v1320_v36, %v1297_v16  ;;  %v2198_v36 = vld [vmem:[%s3476_s10 + $0x18] sm:$0xf0] }
 0x526   : > { %v1324_v47 = vmul.f32 0.5, %v1323_v24  ;;  %v2201_v24 = vor.u32 %v2315_v14, %v2198_v36  ;;  %v2320_v14 = vld [vmem:[%s3478_s12 + $0x14] sm:$0xf0] }
 0x527   : > { %v1335_v48 = vmul.f32 %v2483_v45, %v1331_v46  ;;  %v2188_v46 = vld [vmem:[%s3476_s10] sm:$0xf] }
 0x528   : > { %v1325_v37 = vsub.f32 1.5, %v1324_v47  ;;  %1541 = vmatpush.bf16.msra.mxu1 %v2201_v24  ;;  %v2313_v47 = vld [vmem:[%s3476_s10 + $0x4] sm:$0xf]  ;;  %v2220_v24 = vld [vmem:[%s3478_s12 + $0x18] sm:$0xf0] }
 0x529   : > { %v1339_v31 = vadd.f32 %v2484_v9, %v1335_v48  ;;  %v1344_v58 = vpop.permute.xlu0 %1343 }
 0x52a   : > { %v1326_v49 = vmul.f32 %v2518_v39, %v1325_v37  ;;  %v2190_v37 = vld [vmem:[%s3476_s10 + $0x8] sm:$0xf0] }
 0x52b   : > { %1351 = vrot.lane.b32.xlu1 %v1339_v31, %s2819_s24  ;;  %v2193_v31 = vor.u32 %v2313_v47, %v2190_v37 }
 0x52c   : > { %v1330_v51 = vsel %vm1329_vm0, %v2518_v39, %v1326_v49  ;;  %v2196_v39 = vld [vmem:[%s3476_s10 + $0x10] sm:$0xf]  ;;  %v2486_v49 = vld [vmem:[#allocation8 + $0x4] ss:$0 sm:$0xff] }
 0x52d   : > { %v1332_v52 = vmul.f32 %v1330_v51, %v1298_v22  ;;  %1542 = vmatpush.bf16.msra.mxu1 %v2193_v31  ;;  %v2210_v31 = vld [vmem:[%s3478_s12] sm:$0xf] }
 0x52f   : > { %v1336_v53 = vmul.f32 %v2483_v45, %v1332_v52  ;;  %v2197_v45 = vor.u32 %v2316_v15, %v2196_v39  ;;  %v2218_v15 = vld [vmem:[%s3478_s12 + $0x10] sm:$0xf] }
 0x530   : > { %v2219_v36 = vor.u32 %v2320_v14, %v2218_v15 }
 0x531   : > { %v1340_v54 = vadd.f32 %v2484_v9, %v1336_v53  ;;  %1527 = vmatpush.bf16.msrb.mxu0 %v2197_v45  ;;  %v2314_v9 = vld [vmem:[%s3476_s10 + $0x4] sm:$0xf0]  ;;  %v2319_v45 = vld [vmem:[%s3478_s12 + $0x14] sm:$0xf] }
 0x532   : > { %v2189_v48 = vor.u32 %v2314_v9, %v2188_v46  ;;  %v2223_v46 = vor.u32 %v2319_v45, %v2220_v24 }
 0x533   : > { %1353 = vrot.lane.b32.xlu0 %v1340_v54, %s2819_s24  ;;  %s2333_s24 = sshll.u32 %s2929_s22, 5 }
 0x534   : > { %s1858_s17 = scalar_lea.hbm %s3515_s16, %s2333_s24 }
 0x535   : > { %1528 = vmatpush.bf16.msrb.mxu0 %v2189_v48  ;;  %s1861_s26 = sshll.u32 %s1858_s17, 4  ;;  %s1862_s26 = int_to_ptr.hbm [resolvable:$true] %s1861_s26 }
 0x536   : > { %s2715_s18 = sshra.s32 %s1862_s26, 4  ;;  %s2716_s18 = int_to_ptr.hbm [resolvable:$true] %s2715_s18 }
 0x537   : > { %s2717_s21 = scalar_lea.hbm %s2716_s18, 32  ;;  %p2722_p3 = scmp.lt.s32.totalorder %s2716_s18, %s3515_s16 }
 0x538   : > { %p2718_p0 = scmp.ne.s32.totalorder %s2716_s18, %s2717_s21  ;;  %p2723_p4 = scmp.lt.s32.totalorder %s2721_s7, %s2717_s21 }
 0x53a   : > { %p2719_p1 = pnand %p2718_p0, %p2946_p5  ;;  %p2724_p7 = por %p2723_p4, %p2722_p3 }
 0x53c   : > { %p2720_p2 = pneg %p2719_p1 }
 0x53e   : > { %p2725_p8 = pnand %p2724_p7, %p2720_p2 }
 0x573   : > { %v1346_v60 = vpop.permute.xlu2 %1345 }
 0x59d   : > { %v1352_v59 = vpop.permute.xlu1 %1351 }
 0x59e   : > { %v3230_v63 = vsel %vm677_vm2, %v1344_v58, %v1352_v59  ;;  %v2267_v58 = vor.u32 %v2332_v56, %v2266_v34  ;;  %v2268_v59 = vld [vmem:[%s3478_s12 + $0x78] sm:$0xf0] }
 0x5a0   : > { %1732 = vmatpush.bf16.msrb.mxu2 %v2267_v58 }
 0x5a5   : > { %v1354_v62 = vpop.permute.xlu0 %1353 }
 0x5a6   : > { %v3233_v1 = vsel %vm677_vm2, %v1346_v60, %v1354_v62  ;;  %v2271_v60 = vor.u32 %v2331_v57, %v2268_v59  ;;  %v2258_v62 = vld [vmem:[%s3478_s12 + $0x60] sm:$0xf] }
 0x5a7   : > { %v1359_v2 = vpack.c.bf16 %v3233_v1, %v3230_v63 }
 0x5a8   : > { %1746 = vmatpush.bf16.msrb.mxu3 %v2271_v60 }
 0x5a9   : > { %2174 = vmatmul.msk.bf16.vlgmr.msra.gmra.mxu0 %vm1019_vm7, %v1359_v2  ;;  %v2330_v2 = vld [vmem:[%s3478_s12 + $0x64] sm:$0xf0] }
 0x626   : > { %v1406_v4 = vpop.f32.mrf.mxu0 }
 0x627   : > { %v1407_v5 = vadd.f32 %v2485_v3, %v1406_v4  ;;  %v2259_v4 = vor.u32 %v2330_v2, %v2258_v62 }
 0x629   : > { %v2175_v32 = vmul.f32 -1.442695, %v1407_v5  ;;  %1733 = vmatpush.bf16.msrb.mxu2 %v2259_v4 }
 0x62b   : > { %2519 = vpow2.f32 %v2175_v32 }
 0x62e   : > { %v1408_v7 = vpop.f32.mrf.mxu0 }
 0x62f   : > { %v1409_v10 = vadd.f32 %v2485_v3, %v1408_v7  ;;  %v2329_v3 = vld [vmem:[%s3478_s12 + $0x64] sm:$0xf]  ;;  %v2328_v7 = vld [vmem:[%s3478_s12 + $0x54] sm:$0xf0] }
 0x631   : > { %v2520_v11 = vpop.eup %2519  ;;  %v2176_v12 = vmul.f32 -1.442695, %v1409_v10 }
 0x632   : > { %v1417_v13 = vadd.f32 1.0, %v2520_v11  ;;  %v2252_v11 = vld [vmem:[%s3478_s12 + $0x58] sm:$0xf0] }
 0x633   : > { %2521 = vpow2.f32 %v2176_v12  ;;  %v2255_v12 = vor.u32 %v2327_v8, %v2252_v11 }
 0x634   : > { %2523 = vrcp.f32 %v1417_v13  ;;  %v1430_v26 = vand.u32 2147483648, %v1417_v13  ;;  %vm1424_vm3 = vweird.f32 %v1417_v13  ;;  %v1428_v25 = vand.u32 2147483647, %v1417_v13 }
 0x636   : > { %v1431_v33 = vor.u32 1.1754944e-38, %v1430_v26  ;;  %vm1429_vm9 = vcmp.eq.f32.partialorder %v1428_v25, 8.507059e+37  ;;  %v2324_v26 = vld [vmem:[%s3478_s12 + $0x34] sm:$0xf0]  ;;  %v2323_v25 = vld [vmem:[%s3478_s12 + $0x34] sm:$0xf] }
 0x639   : > { %v2522_v20 = vpop.eup %2521 }
 0x63a   : > { %v2524_v61 = vpop.eup %2523  ;;  %v1418_v16 = vadd.f32 1.0, %v2522_v20  ;;  %v2242_v20 = vld [vmem:[%s3478_s12 + $0x40] sm:$0xf] }
 0x63b   : > { %v1420_v17 = vmul.f32 %v2524_v61, %v1417_v13  ;;  %vm1425_vm1 = vweird.f32 %v2524_v61  ;;  %v1492_v13 = vld [vmem:[%s3477_s11] sm:$0x3] }
 0x63c   : > { %2525 = vrcp.f32 %v1418_v16  ;;  %vm1426_vm4 = vmor %vm1424_vm3, %vm1425_vm1  ;;  %v1445_v50 = vand.u32 2147483648, %v1418_v16  ;;  %v1443_v30 = vand.u32 2147483647, %v1418_v16  ;;  %vm1439_vm10 = vweird.f32 %v1418_v16 }
 0x63d   : > { %v1421_v18 = vsub.f32 1.0, %v1420_v17 }
 0x63e   : > { %v1446_v40 = vor.u32 1.1754944e-38, %v1445_v50  ;;  %vm1444_vm12 = vcmp.eq.f32.partialorder %v1443_v30, 8.507059e+37  ;;  %v2236_v50 = vld [vmem:[%s3478_s12 + $0x38] sm:$0xf0] }
 0x63f   : > { %v1422_v29 = vmul.f32 %v2524_v61, %v1421_v18  ;;  %v2244_v18 = vld [vmem:[%s3478_s12 + $0x48] sm:$0xf0] }
 0x641   : > { %v1423_v22 = vadd.f32 %v2524_v61, %v1422_v29 }
 0x642   : > { %v2526_v19 = vpop.eup %2525 }
 0x643   : > { %v1435_v23 = vmul.f32 %v2526_v19, %v1418_v16  ;;  %v1427_v27 = vsel %vm1426_vm4, %v2524_v61, %v1423_v22  ;;  %vm1440_vm5 = vweird.f32 %v2526_v19  ;;  %v2326_v61 = vld [vmem:[%s3478_s12 + $0x44] sm:$0xf0]  ;;  %v2325_v16 = vld [vmem:[%s3478_s12 + $0x44] sm:$0xf]  ;;  %v1495_v22 = vperm.slane %v1492_v13, 1 }
 0x644   : > { %v1432_v38 = vsel %vm1429_vm9, %v1431_v33, %v1427_v27  ;;  %vm1441_vm11 = vmor %vm1439_vm10, %vm1440_vm5  ;;  %v2243_v17 = vor.u32 %v2326_v61, %v2242_v20  ;;  %v2247_v29 = vor.u32 %v2325_v16, %v2244_v18  ;;  %v2239_v27 = vor.u32 %v2323_v25, %v2236_v50 }
 0x645   : > { %v1436_v0 = vsub.f32 1.0, %v1435_v23  ;;  %v1449_v21 = vmul.f32 %v1432_v38, %v1407_v5  ;;  %v2260_v5 = vld [vmem:[%s3478_s12 + $0x68] sm:$0xf0]  ;;  %v2234_v23 = vld [vmem:[%s3478_s12 + $0x30] sm:$0xf] }
 0x646   : > { %v2263_v32 = vor.u32 %v2329_v3, %v2260_v5  ;;  %v2226_v38 = vld [vmem:[%s3478_s12 + $0x20] sm:$0xf] }
 0x647   : > { %v1437_v28 = vmul.f32 %v2526_v19, %v1436_v0  ;;  %v2235_v0 = vor.u32 %v2324_v26, %v2234_v23  ;;  %v2487_v23 = vld [vmem:[#allocation8 + $0x5] ss:$0 sm:$0xff] }
 0x648   : > { %1747 = vmatpush.bf16.msrb.mxu3 %v2263_v32 }
 0x649   : > { %v1438_v35 = vadd.f32 %v2526_v19, %v1437_v28 }
 0x64b   : > { %v1442_v41 = vsel %vm1441_vm11, %v2526_v19, %v1438_v35  ;;  %v1494_v19 = vperm.slane %v1492_v13, 0 }
 0x64c   : > { %v1447_v42 = vsel %vm1444_vm12, %v1446_v40, %v1442_v41  ;;  %1748 = vmatpush.bf16.msrb.mxu3 %v2255_v12  ;;  %v2322_v40 = vld [vmem:[%s3478_s12 + $0x24] sm:$0xf0]  ;;  %v2321_v41 = vld [vmem:[%s3478_s12 + $0x24] sm:$0xf] }
 0x64d   : > { %v1450_v43 = vmul.f32 %v1447_v42, %v1409_v10  ;;  %v2251_v10 = vor.u32 %v2328_v7, %v2250_v6  ;;  %v2227_v42 = vor.u32 %v2322_v40, %v2226_v38 }
 0x64f   : > { %v1451_v44 = vpack.c.bf16 %v1450_v43, %v1449_v21  ;;  %1734 = vmatpush.bf16.msrb.mxu2 %v2251_v10  ;;  %v2228_v21 = vld [vmem:[%s3478_s12 + $0x28] sm:$0xf0] }
 0x650   : > { %1749 = vmatpush.bf16.msrb.mxu3 %v2247_v29  ;;  %v2231_v39 = vor.u32 %v2321_v41, %v2228_v21 }
 0x651   : > { %2185 = vmatmul.msk.bf16.vlgmr.msra.gmra.mxu3 %vm677_vm2, %v1451_v44 }
 0x653   : > { %1735 = vmatpush.bf16.msrb.mxu2 %v2243_v17 }
 0x654   : > { %1750 = vmatpush.bf16.msrb.mxu3 %v2239_v27 }
 0x657   : > { %1736 = vmatpush.bf16.msrb.mxu2 %v2235_v0 }
 0x658   : > { %1751 = vmatpush.bf16.msrb.mxu3 %v2231_v39 }
 0x65b   : > { %1737 = vmatpush.bf16.msrb.mxu2 %v2227_v42 }
 0x65c   : > { %1752 = vmatpush.bf16.msrb.mxu3 %v2223_v46 }
 0x65f   : > { %1738 = vmatpush.bf16.msrb.mxu2 %v2219_v36 }
 0x6d4   : > { %v1482_v51 = vpop.f32.mrf.mxu3 }
 0x6d5   : > { %v1483_v52 = vadd.f32 %v2486_v49, %v1482_v51  ;;  %v2317_v51 = vld [vmem:[%s3478_s12 + $0x4] sm:$0xf] }
 0x6d7   : > { %1818 = vrot.lane.b32.xlu0 %v1483_v52, %s2821_s23 }
 0x6dc   : > { %v1484_v53 = vpop.f32.mrf.mxu3 }
 0x6dd   : > { %v1485_v54 = vadd.f32 %v2486_v49, %v1484_v53  ;;  %v2318_v49 = vld [vmem:[%s3478_s12 + $0x4] sm:$0xf0]  ;;  %v2212_v53 = vld [vmem:[%s3478_s12 + $0x8] sm:$0xf0] }
 0x6de   : > { %v2215_v34 = vor.u32 %v2317_v51, %v2212_v53 }
 0x6df   : > { %v1487_v55 = vpack.c.bf16 %v1485_v54, %v1483_v52  ;;  %1820 = vrot.lane.b32.xlu0 %v1485_v54, %s2821_s23  ;;  %v2211_v52 = vor.u32 %v2318_v49, %v2210_v31  ;;  %s1842_s23 = scalar_lea.sflag [#allocation4], %s3391_s25 }
 0x6e0   : > { %1753 = vmatpush.bf16.msrb.mxu3 %v2215_v34 }
 0x6e1   : > { %2202 = vmatmul.msk.bf16.vlgmr.msrb.gmra.mxu0 %vm677_vm2, %v1487_v55  ;;  %2203 = vmatmul.msk.bf16.vlgmr.msra.gmra.mxu1 %vm677_vm2, %v1487_v55 }
 0x6e2   : > { %1739 = vmatpush.bf16.msrb.mxu2 %v2211_v52 }
 0x75e   : > { %v1530_v28 = vpop.f32.mrf.mxu0  ;;  %v1544_v30 = vpop.f32.mrf.mxu1 }
 0x75f   : > { %v3330_v33 = vadd.f32 %v1530_v28, %v1494_v19  ;;  %v3332_v35 = vadd.f32 %v1544_v30, %v1495_v22 }
 0x761   : > { %v2204_v43 = vmul.f32 -1.442695, %v3330_v33  ;;  %v2205_v44 = vmul.f32 -1.442695, %v3332_v35 }
 0x763   : > { %2527 = vpow2.f32 %v2204_v43 }
 0x764   : > { %2529 = vpow2.f32 %v2205_v44 }
 0x766   : > { %v1532_v9 = vpop.f32.mrf.mxu0  ;;  %v1546_v47 = vpop.f32.mrf.mxu1 }
 0x767   : > { %v3360_v48 = vadd.f32 %v1532_v9, %v1494_v19  ;;  %v3362_v37 = vadd.f32 %v1546_v47, %v1495_v22 }
 0x769   : > { %v2528_v54 = vpop.eup %2527  ;;  %v2206_v55 = vmul.f32 -1.442695, %v3360_v48  ;;  %v2207_v58 = vmul.f32 -1.442695, %v3362_v37 }
 0x76a   : > { %v2530_v56 = vpop.eup %2529  ;;  %v1561_v57 = vadd.f32 1.0, %v2528_v54 }
 0x76b   : > { %v1562_v59 = vadd.f32 1.0, %v2530_v56  ;;  %2531 = vpow2.f32 %v2206_v55  ;;  %v2488_v56 = vld [vmem:[#allocation8 + $0x6] ss:$0 sm:$0xff] }
 0x76c   : > { %2533 = vrcp.f32 %v1561_v57  ;;  %v1574_v61 = vand.u32 2147483647, %v1561_v57  ;;  %v1576_v19 = vand.u32 2147483648, %v1561_v57  ;;  %vm1570_vm1 = vweird.f32 %v1561_v57 }
 0x76d   : > { %2535 = vrcp.f32 %v1562_v59  ;;  %v1591_v11 = vand.u32 2147483648, %v1562_v59  ;;  %v1589_v13 = vand.u32 2147483647, %v1562_v59  ;;  %vm1585_vm13 = vweird.f32 %v1562_v59 }
 0x76e   : > { %2537 = vpow2.f32 %v2207_v58  ;;  %vm1575_vm4 = vcmp.eq.f32.partialorder %v1574_v61, 8.507059e+37  ;;  %v1577_v42 = vor.u32 1.1754944e-38, %v1576_v19 }
 0x76f   : > { %v1592_v18 = vor.u32 1.1754944e-38, %v1591_v11  ;;  %vm1590_vm0 = vcmp.eq.f32.partialorder %v1589_v13, 8.507059e+37 }
 0x771   : > { %v2532_v60 = vpop.eup %2531 }
 0x772   : > { %v2534_v62 = vpop.eup %2533  ;;  %v1563_v2 = vadd.f32 1.0, %v2532_v60 }
 0x773   : > { %v2536_v3 = vpop.eup %2535  ;;  %v1566_v4 = vmul.f32 %v2534_v62, %v1561_v57  ;;  %vm1571_vm14 = vweird.f32 %v2534_v62 }
 0x774   : > { %v2538_v5 = vpop.eup %2537  ;;  %v1581_v32 = vmul.f32 %v2536_v3, %v1562_v59  ;;  %2539 = vrcp.f32 %v1563_v2  ;;  %vm1586_vm2 = vweird.f32 %v2536_v3  ;;  %v1606_v50 = vand.u32 2147483648, %v1563_v2  ;;  %vm3378_vm3 = vmor %vm1570_vm1, %vm1571_vm14 }
 0x775   : > { %v1567_v6 = vsub.f32 1.0, %v1566_v4  ;;  %v1564_v7 = vadd.f32 1.0, %v2538_v5  ;;  %vm1587_vm15 = vmor %vm1585_vm13, %vm1586_vm2  ;;  %v1604_v41 = vand.u32 2147483647, %v1563_v2  ;;  %vm1600_vm9 = vweird.f32 %v1563_v2 }
 0x776   : > { %v1582_v8 = vsub.f32 1.0, %v1581_v32  ;;  %v1607_v39 = vor.u32 1.1754944e-38, %v1606_v50 }
 0x777   : > { %v1568_v10 = vmul.f32 %v2534_v62, %v1567_v6  ;;  %2541 = vrcp.f32 %v1564_v7  ;;  %v1619_v15 = vand.u32 2147483647, %v1564_v7  ;;  %v1621_v14 = vand.u32 2147483648, %v1564_v7 }
 0x778   : > { %v1583_v12 = vmul.f32 %v2536_v3, %v1582_v8  ;;  %vm1605_vm12 = vcmp.eq.f32.partialorder %v1604_v41, 8.507059e+37  ;;  %vm1615_vm2 = vweird.f32 %v1564_v7 }
 0x779   : > { %v1569_v17 = vadd.f32 %v2534_v62, %v1568_v10  ;;  %v1622_v49 = vor.u32 1.1754944e-38, %v1621_v14  ;;  %vm1620_vm14 = vcmp.eq.f32.partialorder %v1619_v15, 8.507059e+37 }
 0x77a   : > { %v2540_v20 = vpop.eup %2539  ;;  %v1584_v16 = vadd.f32 %v2536_v3, %v1583_v12 }
 0x77b   : > { %v1596_v29 = vmul.f32 %v2540_v20, %v1563_v2  ;;  %v1573_v38 = vsel %vm3378_vm3, %v2534_v62, %v1569_v17  ;;  %vm1601_vm5 = vweird.f32 %v2540_v20 }
 0x77c   : > { %v1588_v22 = vsel %vm1587_vm15, %v2536_v3, %v1584_v16  ;;  %v1578_v45 = vsel %vm1575_vm4, %v1577_v42, %v1573_v38  ;;  %vm1602_vm10 = vmor %vm1600_vm9, %vm1601_vm5 }
 0x77d   : > { %v2542_v26 = vpop.eup %2541  ;;  %v1593_v25 = vsel %vm1590_vm0, %v1592_v18, %v1588_v22  ;;  %v1597_v0 = vsub.f32 1.0, %v1596_v29  ;;  %v1625_v47 = vmul.f32 %v1578_v45, %v3330_v33 }
 0x77e   : > { %v1626_v28 = vmul.f32 %v1593_v25, %v3332_v35  ;;  %v1611_v30 = vmul.f32 %v2542_v26, %v1564_v7  ;;  %vm1616_vm11 = vweird.f32 %v2542_v26 }
 0x77f   : > { %v1598_v40 = vmul.f32 %v2540_v20, %v1597_v0  ;;  %vm1617_vm13 = vmor %vm1615_vm2, %vm1616_vm11 }
 0x780   : > { %v1612_v21 = vsub.f32 1.0, %v1611_v30  ;;  %v1766_v43 = vmul.f32 %v2487_v23, %v1626_v28 }
 0x781   : > { %v1599_v44 = vadd.f32 %v2540_v20, %v1598_v40 }
 0x782   : > { %v1613_v36 = vmul.f32 %v2542_v26, %v1612_v21  ;;  %v1768_v35 = vsel %vm703_vm6, %v1766_v43, 0.0 }
 0x783   : > { %v1603_v24 = vsel %vm1602_vm10, %v2540_v20, %v1599_v44  ;;  %1769 = vadd.xlane.f32.xlu2 %v1768_v35 }
 0x784   : > { %v1608_v46 = vsel %vm1605_vm12, %v1607_v39, %v1603_v24  ;;  %v1614_v9 = vadd.f32 %v2542_v26, %v1613_v36 }
 0x785   : > { %v1627_v31 = vmul.f32 %v1608_v46, %v3360_v48 }
 0x786   : > { %v1618_v51 = vsel %vm1617_vm13, %v2542_v26, %v1614_v9 }
 0x787   : > { %v1623_v52 = vsel %vm1620_vm14, %v1622_v49, %v1618_v51  ;;  %v1629_v53 = vpack.c.bf16 %v1627_v31, %v1625_v47 }
 0x788   : > { %v1628_v54 = vmul.f32 %v1623_v52, %v3362_v37  ;;  %v1646_v37 = vld [vmem:[%s3514_s13] sm:$0x3] }
 0x789   : > { %1740 = vmatmul.bf16.vlgmr.msrb.gmra.mxu2 %v1629_v53  ;;  %1754 = vmatmul.bf16.vlgmr.msrb.gmra.mxu3 %v1629_v53  ;;  %v1648_v3 = vperm.slane %v1646_v37, 0  ;;  %v1649_v4 = vperm.slane %v1646_v37, 1 }
 0x78a   : > { %v1767_v55 = vmul.f32 %v2487_v23, %v1628_v54 }
 0x78c   : > { %v1771_v34 = vsel %vm703_vm6, %v1767_v55, 0.0 }
 0x78d   : > { %1772 = vadd.xlane.f32.xlu1 %v1771_v34 }
 0x7f6   : > { %v1770_v57 = vpop.xlane.xlu2 %1769 }
 0x7f7   : > { %v1776_v33 = vadd.f32 %v2488_v56, %v1770_v57 }
 0x7f9   : > { %v2272_v58 = vmul.f32 -1.442695, %v1776_v33 }
 0x7fb   : > { %2543 = vpow2.f32 %v2272_v58 }
 0x800   : > { %v1773_v48 = vpop.xlane.xlu1 %1772 }
 0x801   : > { %v2544_v59 = vpop.eup %2543  ;;  %v1777_v60 = vadd.f32 %v2488_v56, %v1773_v48 }
 0x802   : > { %v1784_v62 = vadd.f32 1.0, %v2544_v59 }
 0x803   : > { %v2273_v2 = vmul.f32 -1.442695, %v1777_v60 }
 0x804   : > { %2545 = vrcp.f32 %v1784_v62  ;;  %v1797_v20 = vand.u32 2147483648, %v1784_v62  ;;  %v1795_v16 = vand.u32 2147483647, %v1784_v62  ;;  %vm1791_vm15 = vweird.f32 %v1784_v62 }
 0x805   : > { %2547 = vpow2.f32 %v2273_v2 }
 0x806   : > { %v1798_v18 = vor.u32 1.1754944e-38, %v1797_v20  ;;  %vm1796_vm1 = vcmp.eq.f32.partialorder %v1795_v16, 8.507059e+37 }
 0x80a   : > { %v2546_v5 = vpop.eup %2545 }
 0x80b   : > { %v2548_v32 = vpop.eup %2547  ;;  %v1787_v6 = vmul.f32 %v2546_v5, %v1784_v62  ;;  %vm1792_vm6 = vweird.f32 %v2546_v5 }
 0x80c   : > { %v3397_v7 = vadd.f32 1.0, %v2548_v32  ;;  %v1741_v8 = vpop.f32.mrf.mxu2  ;;  %v1755_v10 = vpop.f32.mrf.mxu3  ;;  %vm1793_vm0 = vmor %vm1791_vm15, %vm1792_vm6 }
 0x80d   : > { %v1742_v11 = vadd.f32 %v1741_v8, %v1648_v3  ;;  %v1756_v12 = vadd.f32 %v1755_v10, %v1649_v4  ;;  %v1788_v13 = vsub.f32 1.0, %v1787_v6 }
 0x80e   : > { %2549 = vrcp.f32 %v3397_v7  ;;  %v1812_v28 = vand.u32 2147483648, %v3397_v7  ;;  %v1810_v38 = vand.u32 2147483647, %v3397_v7 }
 0x80f   : > { %1760 = vst [vmem:[%s583_s15] sm:$0xff] %v1742_v11  ;;  %v1789_v61 = vmul.f32 %v2546_v5, %v1788_v13 }
 0x810   : > { %1761 = vst [vmem:[%s583_s15 + $0x8] sm:$0xff] %v1756_v12 }
 0x811   : > { %v1790_v17 = vadd.f32 %v2546_v5, %v1789_v61 }
 0x813   : > { %v1794_v29 = vsel %vm1793_vm0, %v2546_v5, %v1790_v17 }
 0x814   : > { %v2550_v19 = vpop.eup %2549  ;;  %v1799_v22 = vsel %vm1796_vm1, %v1798_v18, %v1794_v29  ;;  %v1743_v23 = vpop.f32.mrf.mxu2 }
 0x815   : > { %v1757_v26 = vpop.f32.mrf.mxu3  ;;  %1826 = vrot.lane.b32.xlu0 %v1799_v22, %s2818_s20  ;;  %v1744_v25 = vadd.f32 %v1743_v23, %v1648_v3  ;;  %v1802_v50 = vmul.f32 %v2550_v19, %v3397_v7  ;;  %vm1807_vm3 = vweird.f32 %v2550_v19 }
 0x816   : > { %v1758_v0 = vadd.f32 %v1757_v26, %v1649_v4 }
 0x817   : > { %1762 = vst [vmem:[%s583_s15 + $0x10] sm:$0xff] %v1744_v25  ;;  %v1803_v27 = vsub.f32 1.0, %v1802_v50 }
 0x818   : > { %1763 = vst [vmem:[%s583_s15 + $0x18] sm:$0xff] %v1758_v0 }
 0x819   : > { %v1804_v30 = vmul.f32 %v2550_v19, %v1803_v27 }
 0x81a   : > { %2728 = shalt.err (!%p2725_p8)
}
 0x81b   : > { %s2824_s15 = smov 256   ;;  %s2825_s24 = smov 16   ;;  %v1805_v40 = vadd.f32 %v2550_v19, %v1804_v30  ;;  %vm1806_vm4 = vweird.f32 %v3397_v7  ;;  %v1813_v41 = vor.u32 1.1754944e-38, %v1812_v28  ;;  %vm1811_vm9 = vcmp.eq.f32.partialorder %v1810_v38, 8.507059e+37  ;;  %v1819_v43 = vpop.permute.xlu0 %1818 }
 0x81c   : > { %2355 = dma.vmem_to_hbm [thread:$0]  (%p2946_p5), %s3404_s27, 512, %s1862_s26, %s1842_s23, %s2824_s15, %s2824_s15, %s2825_s24   ;;  %vm1808_vm5 = vmor %vm1806_vm4, %vm1807_vm3  ;;  %vm1836_vm10 = vcmask 793600   ;;  %v1832_v39 = vsel %vm1019_vm7, %v3230_v63, %v1819_v43 }
 0x81d   : > { %v1809_v42 = vsel %vm1808_vm5, %v2550_v19, %v1805_v40  ;;  %s2048_s28 = sshll.u32 %s3391_s25, 4  ;;  %s2334_s27 = sshll.u32 %s2929_s22, 4 }
 0x81e   : > { %v1814_v21 = vsel %vm1811_vm9, %v1813_v41, %v1809_v42  ;;  %s590_s30 = scalar_lea.vmem [#allocation12], %s2048_s28  ;;  %s3517_s23 = sld [smem:[#allocation31_spill]] }
 0x81f   : > { %1828 = vrot.lane.b32.xlu0 %v1814_v21, %s2818_s20  ;;  %s1876_s18 = sshll.u32 %s590_s30, 4  ;;  %s1847_s22 = scalar_lea.sflag [#allocation13], %s3391_s25  ;;  %s1877_s18 = int_to_ptr.vmem [resolvable:$true] %s1876_s18 }
 0x823   : > { %v1821_v44 = vpop.permute.xlu0 %1820 }
 0x824   : > { %s1875_s20 = scalar_lea.hbm %s3517_s23, %s2334_s27  ;;  %v1833_v63 = vsel %vm1019_vm7, %v3233_v1, %v1821_v44  ;;  %s2749_s14 = scalar_lea.hbm %s3517_s23, 32 }
 0x825   : > { %s1878_s21 = sshll.u32 %s1875_s20, 4  ;;  %s1879_s21 = int_to_ptr.hbm [resolvable:$true] %s1878_s21 }
 0x826   : > { %s2743_s29 = sshra.s32 %s1879_s21, 4  ;;  %s2744_s29 = int_to_ptr.hbm [resolvable:$true] %s2743_s29 }
 0x827   : > { %s2745_s2 = scalar_lea.hbm %s2744_s29, 16  ;;  %p2750_p12 = scmp.lt.s32.totalorder %s2744_s29, %s3517_s23 }
 0x828   : > { %p2746_p9 = scmp.ne.s32.totalorder %s2744_s29, %s2745_s2  ;;  %p2751_p13 = scmp.lt.s32.totalorder %s2749_s14, %s2745_s2 }
 0x82a   : > { %p2747_p10 = pnand %p2746_p9, %p2946_p5  ;;  %p2752_p0 = por %p2751_p13, %p2750_p12 }
 0x82c   : > { %p2748_p11 = pneg %p2747_p10 }
 0x82e   : > { %p2753_p1 = pnand %p2752_p0, %p2748_p11 }
 0x887   : > { %v1827_v15 = vpop.permute.xlu0 %1826 }
 0x888   : > { %v1834_v14 = vsel %vm1023_vm8, %v1832_v39, %v1827_v15 }
 0x889   : > { %v1837_v45 = vsel %vm1836_vm10, %v1834_v14, 0.0 }
 0x88a   : > { %1839 = vst [vmem:[%s590_s30] sm:$0xff] %v1837_v45 }
 0x891   : > { %v1829_v36 = vpop.permute.xlu0 %1828 }
 0x892   : > { %v1835_v35 = vsel %vm1023_vm8, %v1833_v63, %v1829_v36 }
 0x893   : > { %v1838_v24 = vsel %vm1836_vm10, %v1835_v35, 0.0 }
 0x894   : > { %1840 = vst [vmem:[%s590_s30 + $0x8] sm:$0xff] %v1838_v24 }
 0x895   : > { %2756 = shalt.err (!%p2753_p1)
}
 0x896   : > { %s2826_s25 = smov 128   ;;  %s2827_s28 = smov 8  }
 0x897   : > { %2356 = dma.vmem_to_hbm [thread:$0]  (%p2946_p5), %s1877_s18, 256, %s1879_s21, %s1847_s22, %s2826_s25, %s2826_s25, %s2827_s28  }
 0x898 PF: > { %s3518_s27 = sld [smem:[#allocation21_spill]] }
 0x899   : > { %s3519_s30 = sld [smem:[#allocation19_spill]] }
 0x89e   : > { %p2392_p2 = scmp.ge.s32.totalorder %s3518_s27, 2 }
 0x89f   : > { %s1893_s26 = sand.u32 1, %s3519_s30  }
 0x8a0   : > { %p2376_p3 = pnand %p2392_p2, %p2950_p6  ;;  %s1894_s20 = scalar_lea.sflag [#allocation4], %s1893_s26 }
 0x8a2   : > { %p2377_p4 = pneg %p2376_p3 }
 0x8a4   : > { %2786 = dma.done.wait (%p2377_p4), %s1894_s20, 512  }
 0x8a5   : > { %2788 = vsyncadd (%p2377_p4), %s1894_s20, 4294966784  ;;  %s1904_s29 = scalar_lea.sflag [#allocation13], %s1893_s26 }
 0x8a6   : > { %2790 = dma.done.wait (%p2377_p4), %s1904_s29, 256  }
 0x8a7   : > { %2792 = vsyncadd (%p2377_p4), %s1904_s29, 4294967040  ;;  %s3521_s21 = sld [smem:[#allocation22_spill]]  ;;  %s3524_s18 = smov %s2799_s19 }
 0x8a8   : > { %s3522_s2 = sld [smem:[#allocation20_spill]] }
 0x8a9   : > { %s3523_s20 = sld [smem:[#allocation23_spill]] }
 0x8ad   : > { %p32_p5 = scmp.ge.s32.totalorder %s3521_s21, 4  }
 0x8ae   : > { %s3525_s19 = smov %s3522_s2 }
 0x8af   :  { %34 = sbr.rel (!%p32_p5) target bundleno = 15 (0xf), region = 154 }
 0x8b4   :  { %1910 = vsyncpa [#allocation3], 1 }
 0x8b5   :  { %1912 = vsyncpa [#allocation3 + $0x1], 1 }
 0x8b6   :  { %1913 = vsyncpa [#allocation6], 1 }
 0x8b7   :  { %1914 = vsyncpa [#allocation9], 1 }
 0x8b8   :  { %1915 = vsyncpa [#allocation4], 1 }
 0x8b9   :  { %1917 = vsyncpa [#allocation4 + $0x1], 1 }
 0x8ba   :  { %1918 = vsyncpa [#allocation13], 1 }
 0x8bb   :  { %1920 = vsyncpa [#allocation13 + $0x1], 1 }

</bundles_post_ra>
